<compile_context>
chip_gen: v7x
topology: tpu7x:2x2x1
jax: 0.10.0
libtpu: 0.0.40
codegen_flags: <defaults>
</compile_context>

<pallas_src>
import jax
import jax.numpy as jnp
from jax import lax
from jax.experimental import pallas as pl
from jax.experimental.pallas import tpu as pltpu  # noqa: F401  (kept for parity)

# ---- small, module-consistent config ----
VOCAB = 50        # vocab_size
EMB = 64          # embedding_size (default 300 in the module; small here)
HID = 32          # hidden_size
NCLS = 3          # n_classes
B = 2             # batch (per question)
T = 8             # sequence length
PAD_IDX = 0
KCONV = 3         # Conv1d kernel_size
CCONV_IN = 2      # Conv1d in_channels (= num LSTM directions)
CCONV_OUT = 10    # Conv1d out_channels
LCONV = HID - KCONV + 1          # 30
VPAD = 128        # lane padding of the vocab for the in-kernel one-hot
ROWS = 8          # per-step row count padded to one sublane group (2B real rows)
NPAD = 128        # lane-dense padded width of the classifier output
CONV_PAD = 384    # lane-dense padded width of the flattened conv output (10*30=300)

assert 2 * B <= ROWS and VOCAB <= VPAD and CCONV_OUT * LCONV <= CONV_PAD

# Packed gate column order: [i | f | o | g], each block 2H wide = [fwd H | rev H].
# PyTorch LSTM weight row order is (i, f, g, o).
GATE_ORDER = (0, 1, 3, 2)


# ----------------------------------------------------------------------------
# Fused kernel: one-hot embedding+input projection, packed BiLSTM recurrence
# (x0 & x1 batched along rows, fwd+rev packed along lanes), cosine head,
# Linear->Linear->sigmoid, and Conv1d(ht) as a banded matmul.
# ----------------------------------------------------------------------------
def fused_kernel(idsf_ref, idsr_ref, gtab_ref, whh_ref, b_ref,
                 wcv_ref, bcv_ref, w1_ref, b1_ref, w2_ref, b2_ref,
                 out_ref, conv_ref):
    H = HID
    G2 = 2 * H                                   # per-gate packed width [fwd|rev]

    # ---- fused embedding gather + hoisted input projection (one matmul) ----
    # oh[r, v]   = 1 at v = fwd token id of row r, and at VPAD + rev token id.
    # gtab rows 0:VPAD map fwd tokens to fwd gate columns, rows VPAD: map rev.
    pos = lax.broadcasted_iota(jnp.int32, (T * ROWS, 2 * VPAD), 1)
    hot = jnp.logical_or(idsf_ref[...] == pos, idsr_ref[...] == pos)
    oh = jnp.where(hot, 1.0, 0.0).astype(jnp.float32)                # (T*ROWS, 2*VPAD)
    gx = jnp.dot(oh, gtab_ref[...], preferred_element_type=jnp.float32)  # (T*ROWS, 8H)

    whh = whh_ref[...]                            # (2H, 8H) block-diagonal packed
    bias = b_ref[...]                             # (1, 8H)

    h = jnp.zeros((ROWS, G2), jnp.float32)        # [h_f | h_r]; rows 0:B=x0, B:2B=x1
    c = jnp.zeros((ROWS, G2), jnp.float32)
    dot_acc = jnp.zeros((B, G2), jnp.float32)     # sum_t out0*out1  (packed [fwd|rev])
    sq0 = jnp.zeros((B, G2), jnp.float32)         # sum_t out0^2
    sq1 = jnp.zeros((B, G2), jnp.float32)         # sum_t out1^2

    for t in range(T):                            # static unroll (T = 8)
        gx_t = gx[t * ROWS:(t + 1) * ROWS, :]     # aligned (8, 256) tile per step
        gates = jnp.dot(h, whh, preferred_element_type=jnp.float32) + gx_t + bias
        sg = jax.nn.sigmoid(gates[:, :3 * G2])    # contiguous [i | f | o] span
        i = sg[:, 0:G2]
        f = sg[:, G2:2 * G2]
        o = sg[:, 2 * G2:3 * G2]
        g = jnp.tanh(gates[:, 3 * G2:])
        c = f * c + i * g
        h = o * jnp.tanh(c)
        # Cosine stats: sum over time is order-independent, so the reverse-dir
        # lanes (which correspond to original position T-1-t) contribute here.
        h0 = h[0:B]                               # question x0 rows
        h1 = h[B:2 * B]                           # question x1 rows
        dot_acc = dot_acc + h0 * h1
        sq0 = sq0 + h0 * h0
        sq1 = sq1 + h1 * h1

    # ---- head: CosineSimilarity(dim=1) + Linear(2H,64) + Linear(64,C) + sigmoid
    eps = 1e-8
    # Matches current ATen: w12 / sqrt(clamp_min(w1*w2, eps^2)); rsqrt on EUP.
    cos = dot_acc * lax.rsqrt(jnp.maximum(sq0 * sq1, eps * eps))      # (B, 2H)
    hlin = jnp.dot(cos, w1_ref[...], preferred_element_type=jnp.float32) + b1_ref[...]
    y = jnp.dot(hlin, w2_ref[...], preferred_element_type=jnp.float32) + b2_ref[...]
    out_ref[...] = jax.nn.sigmoid(y)              # (B, 128) lane-dense store

    # ---- Conv1d(in=2, out=10, k=3) on ht as ONE banded matmul, lane-dense store.
    # (Dead w.r.t. the module's returned x; kept so the op is not faked away.)
    conv_ref[...] = (jnp.dot(h, wcv_ref[...], preferred_element_type=jnp.float32)
                     + bcv_ref[...])              # (8, 384); rows >= 2B are junk


# ----------------------------------------------------------------------------
# Wrapper: tiny int32 index prep in XLA + one fused pallas_call.
# ----------------------------------------------------------------------------
def lstm_cnn_qa_forward(params, x0_tok, x1_tok):
    B2 = 2 * B
    tok = jnp.concatenate([x0_tok, x1_tok], axis=0).astype(jnp.int32)     # (2B, T)
    pad = jnp.full((T, ROWS - B2), -1, jnp.int32)                         # never matches
    # Row r = t*ROWS + b: fwd id = tok[b, t]; rev id = VPAD + tok[b, T-1-t].
    ids_f = jnp.concatenate([tok.T, pad], axis=1).reshape(T * ROWS, 1)
    ids_r = jnp.concatenate([tok[:, ::-1].T + VPAD, pad], axis=1).reshape(T * ROWS, 1)

    out_pad, conv_pad = pl.pallas_call(
        fused_kernel,
        out_shape=(jax.ShapeDtypeStruct((B, NPAD), jnp.float32),
                   jax.ShapeDtypeStruct((ROWS, CONV_PAD), jnp.float32)),
        in_specs=[
            pl.BlockSpec((T * ROWS, 1), lambda: (0, 0)),
            pl.BlockSpec((T * ROWS, 1), lambda: (0, 0)),
            pl.BlockSpec((2 * VPAD, 8 * HID), lambda: (0, 0)),
            pl.BlockSpec((2 * HID, 8 * HID), lambda: (0, 0)),
            pl.BlockSpec((1, 8 * HID), lambda: (0, 0)),
            pl.BlockSpec((2 * HID, CONV_PAD), lambda: (0, 0)),
            pl.BlockSpec((1, CONV_PAD), lambda: (0, 0)),
            pl.BlockSpec((2 * HID, 64), lambda: (0, 0)),
            pl.BlockSpec((1, 64), lambda: (0, 0)),
            pl.BlockSpec((64, NPAD), lambda: (0, 0)),
            pl.BlockSpec((1, NPAD), lambda: (0, 0)),
        ],
        out_specs=(pl.BlockSpec((B, NPAD), lambda: (0, 0)),
                   pl.BlockSpec((ROWS, CONV_PAD), lambda: (0, 0))),
    )(ids_f, ids_r, params['gtab'], params['whh_pack'], params['b_pack'],
      params['wconv_mat'], params['bconv_mat'],
      params['w1_T'], params['b1'], params['w2_pad_T'], params['b2_pad'])

    x = out_pad[:, :NCLS]                                    # module returns only x
    conv = conv_pad[:B2, :CCONV_OUT * LCONV].reshape(B2, CCONV_OUT, LCONV)
    return x, conv[:B], conv[B:]


forward = jax.jit(lstm_cnn_qa_forward)


# ----------------------------------------------------------------------------
# Parameters (deterministic, PyTorch-default-style init), packed for the kernel.
# self.dropout is unused in the PyTorch forward and nn.LSTM dropout is a no-op
# with num_layers=1, so it is omitted.
# ----------------------------------------------------------------------------
def init_params(key):
    ks = jax.random.split(key, 16)
    kl = 1.0 / (HID ** 0.5)

    def u(k_, shape, bound):
        return jax.random.uniform(k_, shape, jnp.float32, -bound, bound)

    emb = jax.random.normal(ks[0], (VOCAB, EMB), jnp.float32)
    emb = emb.at[PAD_IDX].set(0.0)                            # padding_idx row = 0

    wih_f = u(ks[1], (4 * HID, EMB), kl); whh_f = u(ks[2], (4 * HID, HID), kl)
    bih_f = u(ks[3], (4 * HID,), kl);     bhh_f = u(ks[4], (4 * HID,), kl)
    wih_r = u(ks[5], (4 * HID, EMB), kl); whh_r = u(ks[6], (4 * HID, HID), kl)
    bih_r = u(ks[7], (4 * HID,), kl);     bhh_r = u(ks[8], (4 * HID,), kl)

    kc = 1.0 / ((CCONV_IN * KCONV) ** 0.5)
    wconv = u(ks[9], (CCONV_OUT, CCONV_IN, KCONV), kc)
    bconv = u(ks[10], (CCONV_OUT,), kc)

    k1 = 1.0 / ((2 * HID) ** 0.5)
    w1 = u(ks[11], (64, 2 * HID), k1); b1 = u(ks[12], (64,), k1)
    k2 = 1.0 / (64 ** 0.5)
    w2 = u(ks[13], (NCLS, 64), k2);    b2 = u(ks[14], (NCLS,), k2)

    # ---- pack recurrence: gate columns [i_f,i_r | f_f,f_r | o_f,o_r | g_f,g_r]
    G2 = 2 * HID
    whh_pack = jnp.zeros((G2, 8 * HID), jnp.float32)          # block-diagonal
    b_pack = jnp.zeros((1, 8 * HID), jnp.float32)
    gtab = jnp.zeros((2 * VPAD, 8 * HID), jnp.float32)        # one-hot lookup table
    gproj_f = emb @ wih_f.T                                   # fold emb into input proj
    gproj_r = emb @ wih_r.T
    bsum_f = bih_f + bhh_f
    bsum_r = bih_r + bhh_r
    for q, gidx in enumerate(GATE_ORDER):
        rs, re = gidx * HID, (gidx + 1) * HID                 # torch gate rows
        cf, cr = q * G2, q * G2 + HID                         # packed fwd/rev cols
        whh_pack = whh_pack.at[0:HID, cf:cf + HID].set(whh_f[rs:re, :].T)
        whh_pack = whh_pack.at[HID:G2, cr:cr + HID].set(whh_r[rs:re, :].T)
        b_pack = b_pack.at[0, cf:cf + HID].set(bsum_f[rs:re])
        b_pack = b_pack.at[0, cr:cr + HID].set(bsum_r[rs:re])
        gtab = gtab.at[0:VOCAB, cf:cf + HID].set(gproj_f[:, rs:re])
        gtab = gtab.at[VPAD:VPAD + VOCAB, cr:cr + HID].set(gproj_r[:, rs:re])

    # ---- Conv1d(2,10,3) on ht as a banded matmul on h_cat = [h_f | h_r]:
    # wconv_mat[ci*H + (l+k), o*L + l] = wconv[o, ci, k]
    wconv_mat = jnp.zeros((G2, CONV_PAD), jnp.float32)
    l_idx = jnp.arange(LCONV)
    for o in range(CCONV_OUT):
        for ci in range(CCONV_IN):
            for k in range(KCONV):
                wconv_mat = wconv_mat.at[ci * HID + l_idx + k,
                                         o * LCONV + l_idx].set(wconv[o, ci, k])
    bconv_mat = jnp.zeros((1, CONV_PAD), jnp.float32)
    bconv_mat = bconv_mat.at[0, :CCONV_OUT * LCONV].set(jnp.repeat(bconv, LCONV))

    # Last Linear padded to 128 output lanes (lane-dense store; sliced in wrapper).
    w2_pad_T = jnp.zeros((64, NPAD), jnp.float32).at[:, :NCLS].set(w2.T)
    b2_pad = jnp.zeros((1, NPAD), jnp.float32).at[0, :NCLS].set(b2)

    return dict(gtab=gtab, whh_pack=whh_pack, b_pack=b_pack,
                wconv_mat=wconv_mat, bconv_mat=bconv_mat,
                w1_T=w1.T, b1=b1[None, :], w2_pad_T=w2_pad_T, b2_pad=b2_pad)


if __name__ == "__main__":
    key = jax.random.PRNGKey(0)
    kp, k0, k1 = jax.random.split(key, 3)
    params = init_params(kp)
    x0 = jax.random.randint(k0, (B, T), 0, VOCAB, dtype=jnp.int32)
    x1 = jax.random.randint(k1, (B, T), 0, VOCAB, dtype=jnp.int32)
    x, conv0, conv1 = forward(params, x0, x1)
    jax.block_until_ready((x, conv0, conv1))
    assert x.shape == (B, NCLS) and bool(jnp.all(jnp.isfinite(x)))
    assert bool(jnp.all((x >= 0.0) & (x <= 1.0)))
    assert conv0.shape == (B, CCONV_OUT, LCONV)
    assert conv1.shape == (B, CCONV_OUT, LCONV)
    print("KERNEL_OK")
</pallas_src>

<mosaic_0001>
module attributes {stable_mosaic.version = 11 : i64} {
  func.func @fused_kernel(%arg0: memref<64x1xi32, #tpu.memory_space<vmem>>, %arg1: memref<64x1xi32, #tpu.memory_space<vmem>>, %arg2: memref<256x256xf32, #tpu.memory_space<vmem>>, %arg3: memref<64x256xf32, #tpu.memory_space<vmem>>, %arg4: memref<1x256xf32, #tpu.memory_space<vmem>>, %arg5: memref<64x384xf32, #tpu.memory_space<vmem>>, %arg6: memref<1x384xf32, #tpu.memory_space<vmem>>, %arg7: memref<64x64xf32, #tpu.memory_space<vmem>>, %arg8: memref<1x64xf32, #tpu.memory_space<vmem>>, %arg9: memref<64x128xf32, #tpu.memory_space<vmem>>, %arg10: memref<1x128xf32, #tpu.memory_space<vmem>>, %arg11: memref<2x128xf32, #tpu.memory_space<vmem>>, %arg12: memref<8x384xf32, #tpu.memory_space<vmem>>) attributes {dimension_semantics = [], scalar_prefetch = 0 : i64, scratch_operands = 0 : i64, tpu.core_type = #tpu.core_type<tc>} {
    %0 = tpu.iota {dimensions = array<i32: 1>} : vector<64x256xi32>
    %c0 = arith.constant 0 : index
    %c0_0 = arith.constant 0 : index
    %1 = vector.load %arg0[%c0, %c0_0] : memref<64x1xi32, #tpu.memory_space<vmem>>, vector<64x1xi32>
    %2 = vector.broadcast %1 : vector<64x1xi32> to vector<64x256xi32>
    %3 = arith.cmpi eq, %2, %0 : vector<64x256xi32>
    %c0_1 = arith.constant 0 : index
    %c0_2 = arith.constant 0 : index
    %4 = vector.load %arg1[%c0_1, %c0_2] : memref<64x1xi32, #tpu.memory_space<vmem>>, vector<64x1xi32>
    %5 = vector.broadcast %4 : vector<64x1xi32> to vector<64x256xi32>
    %6 = arith.cmpi eq, %5, %0 : vector<64x256xi32>
    %7 = arith.ori %3, %6 : vector<64x256xi1>
    %cst = arith.constant 1.000000e+00 : f32
    %cst_3 = arith.constant 0.000000e+00 : f32
    %8 = vector.broadcast %cst : f32 to vector<64x256xf32>
    %9 = vector.broadcast %cst_3 : f32 to vector<64x256xf32>
    %10 = arith.select %7, %8, %9 : vector<64x256xi1>, vector<64x256xf32>
    %c0_4 = arith.constant 0 : index
    %c0_5 = arith.constant 0 : index
    %11 = vector.load %arg2[%c0_4, %c0_5] : memref<256x256xf32, #tpu.memory_space<vmem>>, vector<256x256xf32>
    %cst_6 = arith.constant dense<0.000000e+00> : vector<64x256xf32>
    %12 = tpu.matmul %10, %11, %cst_6 {dimension_numbers = #tpu.dot_dimension_numbers<[1], [0], [0], [1], [0, 0, 1, 1], [], []>} : vector<64x256xf32>, vector<256x256xf32>, vector<64x256xf32> -> vector<64x256xf32>
    %c0_7 = arith.constant 0 : index
    %c0_8 = arith.constant 0 : index
    %13 = vector.load %arg3[%c0_7, %c0_8] : memref<64x256xf32, #tpu.memory_space<vmem>>, vector<64x256xf32>
    %c0_9 = arith.constant 0 : index
    %c0_10 = arith.constant 0 : index
    %14 = vector.load %arg4[%c0_9, %c0_10] : memref<1x256xf32, #tpu.memory_space<vmem>>, vector<1x256xf32>
    %cst_11 = arith.constant 0.000000e+00 : f32
    %15 = vector.broadcast %cst_11 : f32 to vector<8x64xf32>
    %cst_12 = arith.constant 0.000000e+00 : f32
    %16 = vector.broadcast %cst_12 : f32 to vector<8x64xf32>
    %cst_13 = arith.constant 0.000000e+00 : f32
    %17 = vector.broadcast %cst_13 : f32 to vector<2x64xf32>
    %cst_14 = arith.constant 0.000000e+00 : f32
    %18 = vector.broadcast %cst_14 : f32 to vector<2x64xf32>
    %cst_15 = arith.constant 0.000000e+00 : f32
    %19 = vector.broadcast %cst_15 : f32 to vector<2x64xf32>
    %20 = vector.extract_strided_slice %12 {offsets = [0, 0], sizes = [8, 256], strides = [1, 1]} : vector<64x256xf32> to vector<8x256xf32>
    %cst_16 = arith.constant dense<0.000000e+00> : vector<8x256xf32>
    %21 = tpu.matmul %15, %13, %cst_16 {dimension_numbers = #tpu.dot_dimension_numbers<[1], [0], [0], [1], [0, 0, 1, 1], [], []>} : vector<8x64xf32>, vector<64x256xf32>, vector<8x256xf32> -> vector<8x256xf32>
    %22 = arith.addf %21, %20 : vector<8x256xf32>
    %23 = vector.broadcast %14 : vector<1x256xf32> to vector<8x256xf32>
    %24 = arith.addf %22, %23 : vector<8x256xf32>
    %25 = vector.extract_strided_slice %24 {offsets = [0, 0], sizes = [8, 192], strides = [1, 1]} : vector<8x256xf32> to vector<8x192xf32>
    %26 = arith.negf %25 : vector<8x192xf32>
    %27 = math.exp %26 : vector<8x192xf32>
    %cst_17 = arith.constant 1.000000e+00 : f32
    %28 = vector.broadcast %cst_17 : f32 to vector<8x192xf32>
    %29 = arith.addf %28, %27 : vector<8x192xf32>
    %30 = arith.divf %28, %29 : vector<8x192xf32>
    %31 = vector.extract_strided_slice %30 {offsets = [0, 0], sizes = [8, 64], strides = [1, 1]} : vector<8x192xf32> to vector<8x64xf32>
    %32 = vector.extract_strided_slice %30 {offsets = [0, 64], sizes = [8, 64], strides = [1, 1]} : vector<8x192xf32> to vector<8x64xf32>
    %33 = vector.extract_strided_slice %30 {offsets = [0, 128], sizes = [8, 64], strides = [1, 1]} : vector<8x192xf32> to vector<8x64xf32>
    %34 = vector.extract_strided_slice %24 {offsets = [0, 192], sizes = [8, 64], strides = [1, 1]} : vector<8x256xf32> to vector<8x64xf32>
    %35 = math.tanh %34 : vector<8x64xf32>
    %36 = arith.mulf %32, %16 : vector<8x64xf32>
    %37 = arith.mulf %31, %35 : vector<8x64xf32>
    %38 = arith.addf %36, %37 : vector<8x64xf32>
    %39 = math.tanh %38 : vector<8x64xf32>
    %40 = arith.mulf %33, %39 : vector<8x64xf32>
    %41 = vector.extract_strided_slice %40 {offsets = [0, 0], sizes = [2, 64], strides = [1, 1]} : vector<8x64xf32> to vector<2x64xf32>
    %42 = vector.extract_strided_slice %40 {offsets = [2, 0], sizes = [2, 64], strides = [1, 1]} : vector<8x64xf32> to vector<2x64xf32>
    %43 = arith.mulf %41, %42 : vector<2x64xf32>
    %44 = arith.addf %17, %43 : vector<2x64xf32>
    %45 = arith.mulf %41, %41 : vector<2x64xf32>
    %46 = arith.addf %18, %45 : vector<2x64xf32>
    %47 = arith.mulf %42, %42 : vector<2x64xf32>
    %48 = arith.addf %19, %47 : vector<2x64xf32>
    %49 = vector.extract_strided_slice %12 {offsets = [8, 0], sizes = [8, 256], strides = [1, 1]} : vector<64x256xf32> to vector<8x256xf32>
    %cst_18 = arith.constant dense<0.000000e+00> : vector<8x256xf32>
    %50 = tpu.matmul %40, %13, %cst_18 {dimension_numbers = #tpu.dot_dimension_numbers<[1], [0], [0], [1], [0, 0, 1, 1], [], []>} : vector<8x64xf32>, vector<64x256xf32>, vector<8x256xf32> -> vector<8x256xf32>
    %51 = arith.addf %50, %49 : vector<8x256xf32>
    %52 = vector.broadcast %14 : vector<1x256xf32> to vector<8x256xf32>
    %53 = arith.addf %51, %52 : vector<8x256xf32>
    %54 = vector.extract_strided_slice %53 {offsets = [0, 0], sizes = [8, 192], strides = [1, 1]} : vector<8x256xf32> to vector<8x192xf32>
    %55 = arith.negf %54 : vector<8x192xf32>
    %56 = math.exp %55 : vector<8x192xf32>
    %cst_19 = arith.constant 1.000000e+00 : f32
    %57 = vector.broadcast %cst_19 : f32 to vector<8x192xf32>
    %58 = arith.addf %57, %56 : vector<8x192xf32>
    %59 = arith.divf %57, %58 : vector<8x192xf32>
    %60 = vector.extract_strided_slice %59 {offsets = [0, 0], sizes = [8, 64], strides = [1, 1]} : vector<8x192xf32> to vector<8x64xf32>
    %61 = vector.extract_strided_slice %59 {offsets = [0, 64], sizes = [8, 64], strides = [1, 1]} : vector<8x192xf32> to vector<8x64xf32>
    %62 = vector.extract_strided_slice %59 {offsets = [0, 128], sizes = [8, 64], strides = [1, 1]} : vector<8x192xf32> to vector<8x64xf32>
    %63 = vector.extract_strided_slice %53 {offsets = [0, 192], sizes = [8, 64], strides = [1, 1]} : vector<8x256xf32> to vector<8x64xf32>
    %64 = math.tanh %63 : vector<8x64xf32>
    %65 = arith.mulf %61, %38 : vector<8x64xf32>
    %66 = arith.mulf %60, %64 : vector<8x64xf32>
    %67 = arith.addf %65, %66 : vector<8x64xf32>
    %68 = math.tanh %67 : vector<8x64xf32>
    %69 = arith.mulf %62, %68 : vector<8x64xf32>
    %70 = vector.extract_strided_slice %69 {offsets = [0, 0], sizes = [2, 64], strides = [1, 1]} : vector<8x64xf32> to vector<2x64xf32>
    %71 = vector.extract_strided_slice %69 {offsets = [2, 0], sizes = [2, 64], strides = [1, 1]} : vector<8x64xf32> to vector<2x64xf32>
    %72 = arith.mulf %70, %71 : vector<2x64xf32>
    %73 = arith.addf %44, %72 : vector<2x64xf32>
    %74 = arith.mulf %70, %70 : vector<2x64xf32>
    %75 = arith.addf %46, %74 : vector<2x64xf32>
    %76 = arith.mulf %71, %71 : vector<2x64xf32>
    %77 = arith.addf %48, %76 : vector<2x64xf32>
    %78 = vector.extract_strided_slice %12 {offsets = [16, 0], sizes = [8, 256], strides = [1, 1]} : vector<64x256xf32> to vector<8x256xf32>
    %cst_20 = arith.constant dense<0.000000e+00> : vector<8x256xf32>
    %79 = tpu.matmul %69, %13, %cst_20 {dimension_numbers = #tpu.dot_dimension_numbers<[1], [0], [0], [1], [0, 0, 1, 1], [], []>} : vector<8x64xf32>, vector<64x256xf32>, vector<8x256xf32> -> vector<8x256xf32>
    %80 = arith.addf %79, %78 : vector<8x256xf32>
    %81 = vector.broadcast %14 : vector<1x256xf32> to vector<8x256xf32>
    %82 = arith.addf %80, %81 : vector<8x256xf32>
    %83 = vector.extract_strided_slice %82 {offsets = [0, 0], sizes = [8, 192], strides = [1, 1]} : vector<8x256xf32> to vector<8x192xf32>
    %84 = arith.negf %83 : vector<8x192xf32>
    %85 = math.exp %84 : vector<8x192xf32>
    %cst_21 = arith.constant 1.000000e+00 : f32
    %86 = vector.broadcast %cst_21 : f32 to vector<8x192xf32>
    %87 = arith.addf %86, %85 : vector<8x192xf32>
    %88 = arith.divf %86, %87 : vector<8x192xf32>
    %89 = vector.extract_strided_slice %88 {offsets = [0, 0], sizes = [8, 64], strides = [1, 1]} : vector<8x192xf32> to vector<8x64xf32>
    %90 = vector.extract_strided_slice %88 {offsets = [0, 64], sizes = [8, 64], strides = [1, 1]} : vector<8x192xf32> to vector<8x64xf32>
    %91 = vector.extract_strided_slice %88 {offsets = [0, 128], sizes = [8, 64], strides = [1, 1]} : vector<8x192xf32> to vector<8x64xf32>
    %92 = vector.extract_strided_slice %82 {offsets = [0, 192], sizes = [8, 64], strides = [1, 1]} : vector<8x256xf32> to vector<8x64xf32>
    %93 = math.tanh %92 : vector<8x64xf32>
    %94 = arith.mulf %90, %67 : vector<8x64xf32>
    %95 = arith.mulf %89, %93 : vector<8x64xf32>
    %96 = arith.addf %94, %95 : vector<8x64xf32>
    %97 = math.tanh %96 : vector<8x64xf32>
    %98 = arith.mulf %91, %97 : vector<8x64xf32>
    %99 = vector.extract_strided_slice %98 {offsets = [0, 0], sizes = [2, 64], strides = [1, 1]} : vector<8x64xf32> to vector<2x64xf32>
    %100 = vector.extract_strided_slice %98 {offsets = [2, 0], sizes = [2, 64], strides = [1, 1]} : vector<8x64xf32> to vector<2x64xf32>
    %101 = arith.mulf %99, %100 : vector<2x64xf32>
    %102 = arith.addf %73, %101 : vector<2x64xf32>
    %103 = arith.mulf %99, %99 : vector<2x64xf32>
    %104 = arith.addf %75, %103 : vector<2x64xf32>
    %105 = arith.mulf %100, %100 : vector<2x64xf32>
    %106 = arith.addf %77, %105 : vector<2x64xf32>
    %107 = vector.extract_strided_slice %12 {offsets = [24, 0], sizes = [8, 256], strides = [1, 1]} : vector<64x256xf32> to vector<8x256xf32>
    %cst_22 = arith.constant dense<0.000000e+00> : vector<8x256xf32>
    %108 = tpu.matmul %98, %13, %cst_22 {dimension_numbers = #tpu.dot_dimension_numbers<[1], [0], [0], [1], [0, 0, 1, 1], [], []>} : vector<8x64xf32>, vector<64x256xf32>, vector<8x256xf32> -> vector<8x256xf32>
    %109 = arith.addf %108, %107 : vector<8x256xf32>
    %110 = vector.broadcast %14 : vector<1x256xf32> to vector<8x256xf32>
    %111 = arith.addf %109, %110 : vector<8x256xf32>
    %112 = vector.extract_strided_slice %111 {offsets = [0, 0], sizes = [8, 192], strides = [1, 1]} : vector<8x256xf32> to vector<8x192xf32>
    %113 = arith.negf %112 : vector<8x192xf32>
    %114 = math.exp %113 : vector<8x192xf32>
    %cst_23 = arith.constant 1.000000e+00 : f32
    %115 = vector.broadcast %cst_23 : f32 to vector<8x192xf32>
    %116 = arith.addf %115, %114 : vector<8x192xf32>
    %117 = arith.divf %115, %116 : vector<8x192xf32>
    %118 = vector.extract_strided_slice %117 {offsets = [0, 0], sizes = [8, 64], strides = [1, 1]} : vector<8x192xf32> to vector<8x64xf32>
    %119 = vector.extract_strided_slice %117 {offsets = [0, 64], sizes = [8, 64], strides = [1, 1]} : vector<8x192xf32> to vector<8x64xf32>
    %120 = vector.extract_strided_slice %117 {offsets = [0, 128], sizes = [8, 64], strides = [1, 1]} : vector<8x192xf32> to vector<8x64xf32>
    %121 = vector.extract_strided_slice %111 {offsets = [0, 192], sizes = [8, 64], strides = [1, 1]} : vector<8x256xf32> to vector<8x64xf32>
    %122 = math.tanh %121 : vector<8x64xf32>
    %123 = arith.mulf %119, %96 : vector<8x64xf32>
    %124 = arith.mulf %118, %122 : vector<8x64xf32>
    %125 = arith.addf %123, %124 : vector<8x64xf32>
    %126 = math.tanh %125 : vector<8x64xf32>
    %127 = arith.mulf %120, %126 : vector<8x64xf32>
    %128 = vector.extract_strided_slice %127 {offsets = [0, 0], sizes = [2, 64], strides = [1, 1]} : vector<8x64xf32> to vector<2x64xf32>
    %129 = vector.extract_strided_slice %127 {offsets = [2, 0], sizes = [2, 64], strides = [1, 1]} : vector<8x64xf32> to vector<2x64xf32>
    %130 = arith.mulf %128, %129 : vector<2x64xf32>
    %131 = arith.addf %102, %130 : vector<2x64xf32>
    %132 = arith.mulf %128, %128 : vector<2x64xf32>
    %133 = arith.addf %104, %132 : vector<2x64xf32>
    %134 = arith.mulf %129, %129 : vector<2x64xf32>
    %135 = arith.addf %106, %134 : vector<2x64xf32>
    %136 = vector.extract_strided_slice %12 {offsets = [32, 0], sizes = [8, 256], strides = [1, 1]} : vector<64x256xf32> to vector<8x256xf32>
    %cst_24 = arith.constant dense<0.000000e+00> : vector<8x256xf32>
    %137 = tpu.matmul %127, %13, %cst_24 {dimension_numbers = #tpu.dot_dimension_numbers<[1], [0], [0], [1], [0, 0, 1, 1], [], []>} : vector<8x64xf32>, vector<64x256xf32>, vector<8x256xf32> -> vector<8x256xf32>
    %138 = arith.addf %137, %136 : vector<8x256xf32>
    %139 = vector.broadcast %14 : vector<1x256xf32> to vector<8x256xf32>
    %140 = arith.addf %138, %139 : vector<8x256xf32>
    %141 = vector.extract_strided_slice %140 {offsets = [0, 0], sizes = [8, 192], strides = [1, 1]} : vector<8x256xf32> to vector<8x192xf32>
    %142 = arith.negf %141 : vector<8x192xf32>
    %143 = math.exp %142 : vector<8x192xf32>
    %cst_25 = arith.constant 1.000000e+00 : f32
    %144 = vector.broadcast %cst_25 : f32 to vector<8x192xf32>
    %145 = arith.addf %144, %143 : vector<8x192xf32>
    %146 = arith.divf %144, %145 : vector<8x192xf32>
    %147 = vector.extract_strided_slice %146 {offsets = [0, 0], sizes = [8, 64], strides = [1, 1]} : vector<8x192xf32> to vector<8x64xf32>
    %148 = vector.extract_strided_slice %146 {offsets = [0, 64], sizes = [8, 64], strides = [1, 1]} : vector<8x192xf32> to vector<8x64xf32>
    %149 = vector.extract_strided_slice %146 {offsets = [0, 128], sizes = [8, 64], strides = [1, 1]} : vector<8x192xf32> to vector<8x64xf32>
    %150 = vector.extract_strided_slice %140 {offsets = [0, 192], sizes = [8, 64], strides = [1, 1]} : vector<8x256xf32> to vector<8x64xf32>
    %151 = math.tanh %150 : vector<8x64xf32>
    %152 = arith.mulf %148, %125 : vector<8x64xf32>
    %153 = arith.mulf %147, %151 : vector<8x64xf32>
    %154 = arith.addf %152, %153 : vector<8x64xf32>
    %155 = math.tanh %154 : vector<8x64xf32>
    %156 = arith.mulf %149, %155 : vector<8x64xf32>
    %157 = vector.extract_strided_slice %156 {offsets = [0, 0], sizes = [2, 64], strides = [1, 1]} : vector<8x64xf32> to vector<2x64xf32>
    %158 = vector.extract_strided_slice %156 {offsets = [2, 0], sizes = [2, 64], strides = [1, 1]} : vector<8x64xf32> to vector<2x64xf32>
    %159 = arith.mulf %157, %158 : vector<2x64xf32>
    %160 = arith.addf %131, %159 : vector<2x64xf32>
    %161 = arith.mulf %157, %157 : vector<2x64xf32>
    %162 = arith.addf %133, %161 : vector<2x64xf32>
    %163 = arith.mulf %158, %158 : vector<2x64xf32>
    %164 = arith.addf %135, %163 : vector<2x64xf32>
    %165 = vector.extract_strided_slice %12 {offsets = [40, 0], sizes = [8, 256], strides = [1, 1]} : vector<64x256xf32> to vector<8x256xf32>
    %cst_26 = arith.constant dense<0.000000e+00> : vector<8x256xf32>
    %166 = tpu.matmul %156, %13, %cst_26 {dimension_numbers = #tpu.dot_dimension_numbers<[1], [0], [0], [1], [0, 0, 1, 1], [], []>} : vector<8x64xf32>, vector<64x256xf32>, vector<8x256xf32> -> vector<8x256xf32>
    %167 = arith.addf %166, %165 : vector<8x256xf32>
    %168 = vector.broadcast %14 : vector<1x256xf32> to vector<8x256xf32>
    %169 = arith.addf %167, %168 : vector<8x256xf32>
    %170 = vector.extract_strided_slice %169 {offsets = [0, 0], sizes = [8, 192], strides = [1, 1]} : vector<8x256xf32> to vector<8x192xf32>
    %171 = arith.negf %170 : vector<8x192xf32>
    %172 = math.exp %171 : vector<8x192xf32>
    %cst_27 = arith.constant 1.000000e+00 : f32
    %173 = vector.broadcast %cst_27 : f32 to vector<8x192xf32>
    %174 = arith.addf %173, %172 : vector<8x192xf32>
    %175 = arith.divf %173, %174 : vector<8x192xf32>
    %176 = vector.extract_strided_slice %175 {offsets = [0, 0], sizes = [8, 64], strides = [1, 1]} : vector<8x192xf32> to vector<8x64xf32>
    %177 = vector.extract_strided_slice %175 {offsets = [0, 64], sizes = [8, 64], strides = [1, 1]} : vector<8x192xf32> to vector<8x64xf32>
    %178 = vector.extract_strided_slice %175 {offsets = [0, 128], sizes = [8, 64], strides = [1, 1]} : vector<8x192xf32> to vector<8x64xf32>
    %179 = vector.extract_strided_slice %169 {offsets = [0, 192], sizes = [8, 64], strides = [1, 1]} : vector<8x256xf32> to vector<8x64xf32>
    %180 = math.tanh %179 : vector<8x64xf32>
    %181 = arith.mulf %177, %154 : vector<8x64xf32>
    %182 = arith.mulf %176, %180 : vector<8x64xf32>
    %183 = arith.addf %181, %182 : vector<8x64xf32>
    %184 = math.tanh %183 : vector<8x64xf32>
    %185 = arith.mulf %178, %184 : vector<8x64xf32>
    %186 = vector.extract_strided_slice %185 {offsets = [0, 0], sizes = [2, 64], strides = [1, 1]} : vector<8x64xf32> to vector<2x64xf32>
    %187 = vector.extract_strided_slice %185 {offsets = [2, 0], sizes = [2, 64], strides = [1, 1]} : vector<8x64xf32> to vector<2x64xf32>
    %188 = arith.mulf %186, %187 : vector<2x64xf32>
    %189 = arith.addf %160, %188 : vector<2x64xf32>
    %190 = arith.mulf %186, %186 : vector<2x64xf32>
    %191 = arith.addf %162, %190 : vector<2x64xf32>
    %192 = arith.mulf %187, %187 : vector<2x64xf32>
    %193 = arith.addf %164, %192 : vector<2x64xf32>
    %194 = vector.extract_strided_slice %12 {offsets = [48, 0], sizes = [8, 256], strides = [1, 1]} : vector<64x256xf32> to vector<8x256xf32>
    %cst_28 = arith.constant dense<0.000000e+00> : vector<8x256xf32>
    %195 = tpu.matmul %185, %13, %cst_28 {dimension_numbers = #tpu.dot_dimension_numbers<[1], [0], [0], [1], [0, 0, 1, 1], [], []>} : vector<8x64xf32>, vector<64x256xf32>, vector<8x256xf32> -> vector<8x256xf32>
    %196 = arith.addf %195, %194 : vector<8x256xf32>
    %197 = vector.broadcast %14 : vector<1x256xf32> to vector<8x256xf32>
    %198 = arith.addf %196, %197 : vector<8x256xf32>
    %199 = vector.extract_strided_slice %198 {offsets = [0, 0], sizes = [8, 192], strides = [1, 1]} : vector<8x256xf32> to vector<8x192xf32>
    %200 = arith.negf %199 : vector<8x192xf32>
    %201 = math.exp %200 : vector<8x192xf32>
    %cst_29 = arith.constant 1.000000e+00 : f32
    %202 = vector.broadcast %cst_29 : f32 to vector<8x192xf32>
    %203 = arith.addf %202, %201 : vector<8x192xf32>
    %204 = arith.divf %202, %203 : vector<8x192xf32>
    %205 = vector.extract_strided_slice %204 {offsets = [0, 0], sizes = [8, 64], strides = [1, 1]} : vector<8x192xf32> to vector<8x64xf32>
    %206 = vector.extract_strided_slice %204 {offsets = [0, 64], sizes = [8, 64], strides = [1, 1]} : vector<8x192xf32> to vector<8x64xf32>
    %207 = vector.extract_strided_slice %204 {offsets = [0, 128], sizes = [8, 64], strides = [1, 1]} : vector<8x192xf32> to vector<8x64xf32>
    %208 = vector.extract_strided_slice %198 {offsets = [0, 192], sizes = [8, 64], strides = [1, 1]} : vector<8x256xf32> to vector<8x64xf32>
    %209 = math.tanh %208 : vector<8x64xf32>
    %210 = arith.mulf %206, %183 : vector<8x64xf32>
    %211 = arith.mulf %205, %209 : vector<8x64xf32>
    %212 = arith.addf %210, %211 : vector<8x64xf32>
    %213 = math.tanh %212 : vector<8x64xf32>
    %214 = arith.mulf %207, %213 : vector<8x64xf32>
    %215 = vector.extract_strided_slice %214 {offsets = [0, 0], sizes = [2, 64], strides = [1, 1]} : vector<8x64xf32> to vector<2x64xf32>
    %216 = vector.extract_strided_slice %214 {offsets = [2, 0], sizes = [2, 64], strides = [1, 1]} : vector<8x64xf32> to vector<2x64xf32>
    %217 = arith.mulf %215, %216 : vector<2x64xf32>
    %218 = arith.addf %189, %217 : vector<2x64xf32>
    %219 = arith.mulf %215, %215 : vector<2x64xf32>
    %220 = arith.addf %191, %219 : vector<2x64xf32>
    %221 = arith.mulf %216, %216 : vector<2x64xf32>
    %222 = arith.addf %193, %221 : vector<2x64xf32>
    %223 = vector.extract_strided_slice %12 {offsets = [56, 0], sizes = [8, 256], strides = [1, 1]} : vector<64x256xf32> to vector<8x256xf32>
    %cst_30 = arith.constant dense<0.000000e+00> : vector<8x256xf32>
    %224 = tpu.matmul %214, %13, %cst_30 {dimension_numbers = #tpu.dot_dimension_numbers<[1], [0], [0], [1], [0, 0, 1, 1], [], []>} : vector<8x64xf32>, vector<64x256xf32>, vector<8x256xf32> -> vector<8x256xf32>
    %225 = arith.addf %224, %223 : vector<8x256xf32>
    %226 = vector.broadcast %14 : vector<1x256xf32> to vector<8x256xf32>
    %227 = arith.addf %225, %226 : vector<8x256xf32>
    %228 = vector.extract_strided_slice %227 {offsets = [0, 0], sizes = [8, 192], strides = [1, 1]} : vector<8x256xf32> to vector<8x192xf32>
    %229 = arith.negf %228 : vector<8x192xf32>
    %230 = math.exp %229 : vector<8x192xf32>
    %cst_31 = arith.constant 1.000000e+00 : f32
    %231 = vector.broadcast %cst_31 : f32 to vector<8x192xf32>
    %232 = arith.addf %231, %230 : vector<8x192xf32>
    %233 = arith.divf %231, %232 : vector<8x192xf32>
    %234 = vector.extract_strided_slice %233 {offsets = [0, 0], sizes = [8, 64], strides = [1, 1]} : vector<8x192xf32> to vector<8x64xf32>
    %235 = vector.extract_strided_slice %233 {offsets = [0, 64], sizes = [8, 64], strides = [1, 1]} : vector<8x192xf32> to vector<8x64xf32>
    %236 = vector.extract_strided_slice %233 {offsets = [0, 128], sizes = [8, 64], strides = [1, 1]} : vector<8x192xf32> to vector<8x64xf32>
    %237 = vector.extract_strided_slice %227 {offsets = [0, 192], sizes = [8, 64], strides = [1, 1]} : vector<8x256xf32> to vector<8x64xf32>
    %238 = math.tanh %237 : vector<8x64xf32>
    %239 = arith.mulf %235, %212 : vector<8x64xf32>
    %240 = arith.mulf %234, %238 : vector<8x64xf32>
    %241 = arith.addf %239, %240 : vector<8x64xf32>
    %242 = math.tanh %241 : vector<8x64xf32>
    %243 = arith.mulf %236, %242 : vector<8x64xf32>
    %244 = vector.extract_strided_slice %243 {offsets = [0, 0], sizes = [2, 64], strides = [1, 1]} : vector<8x64xf32> to vector<2x64xf32>
    %245 = vector.extract_strided_slice %243 {offsets = [2, 0], sizes = [2, 64], strides = [1, 1]} : vector<8x64xf32> to vector<2x64xf32>
    %246 = arith.mulf %244, %245 : vector<2x64xf32>
    %247 = arith.addf %218, %246 : vector<2x64xf32>
    %248 = arith.mulf %244, %244 : vector<2x64xf32>
    %249 = arith.addf %220, %248 : vector<2x64xf32>
    %250 = arith.mulf %245, %245 : vector<2x64xf32>
    %251 = arith.addf %222, %250 : vector<2x64xf32>
    %252 = arith.mulf %249, %251 : vector<2x64xf32>
    %cst_32 = arith.constant 1.000000e-16 : f32
    %253 = vector.broadcast %cst_32 : f32 to vector<2x64xf32>
    %254 = arith.maximumf %252, %253 : vector<2x64xf32>
    %255 = math.rsqrt %254 : vector<2x64xf32>
    %256 = arith.mulf %247, %255 : vector<2x64xf32>
    %c0_33 = arith.constant 0 : index
    %c0_34 = arith.constant 0 : index
    %257 = vector.load %arg7[%c0_33, %c0_34] : memref<64x64xf32, #tpu.memory_space<vmem>>, vector<64x64xf32>
    %cst_35 = arith.constant dense<0.000000e+00> : vector<2x64xf32>
    %258 = tpu.matmul %256, %257, %cst_35 {dimension_numbers = #tpu.dot_dimension_numbers<[1], [0], [0], [1], [0, 0, 1, 1], [], []>} : vector<2x64xf32>, vector<64x64xf32>, vector<2x64xf32> -> vector<2x64xf32>
    %c0_36 = arith.constant 0 : index
    %c0_37 = arith.constant 0 : index
    %259 = vector.load %arg8[%c0_36, %c0_37] : memref<1x64xf32, #tpu.memory_space<vmem>>, vector<1x64xf32>
    %260 = vector.broadcast %259 : vector<1x64xf32> to vector<2x64xf32>
    %261 = arith.addf %258, %260 : vector<2x64xf32>
    %c0_38 = arith.constant 0 : index
    %c0_39 = arith.constant 0 : index
    %262 = vector.load %arg9[%c0_38, %c0_39] : memref<64x128xf32, #tpu.memory_space<vmem>>, vector<64x128xf32>
    %cst_40 = arith.constant dense<0.000000e+00> : vector<2x128xf32>
    %263 = tpu.matmul %261, %262, %cst_40 {dimension_numbers = #tpu.dot_dimension_numbers<[1], [0], [0], [1], [0, 0, 1, 1], [], []>} : vector<2x64xf32>, vector<64x128xf32>, vector<2x128xf32> -> vector<2x128xf32>
    %c0_41 = arith.constant 0 : index
    %c0_42 = arith.constant 0 : index
    %264 = vector.load %arg10[%c0_41, %c0_42] : memref<1x128xf32, #tpu.memory_space<vmem>>, vector<1x128xf32>
    %265 = vector.broadcast %264 : vector<1x128xf32> to vector<2x128xf32>
    %266 = arith.addf %263, %265 : vector<2x128xf32>
    %267 = arith.negf %266 : vector<2x128xf32>
    %268 = math.exp %267 : vector<2x128xf32>
    %cst_43 = arith.constant 1.000000e+00 : f32
    %269 = vector.broadcast %cst_43 : f32 to vector<2x128xf32>
    %270 = arith.addf %269, %268 : vector<2x128xf32>
    %271 = arith.divf %269, %270 : vector<2x128xf32>
    %c0_44 = arith.constant 0 : index
    %c0_45 = arith.constant 0 : index
    %272 = vector.load %arg11[%c0_44, %c0_45] : memref<2x128xf32, #tpu.memory_space<vmem>>, vector<2x128xf32>
    tpu.vector_store %arg11[%c0_44, %c0_45], %271 {strides = array<i32>} : memref<2x128xf32, #tpu.memory_space<vmem>>, vector<2x128xf32>,
    %c0_46 = arith.constant 0 : index
    %c0_47 = arith.constant 0 : index
    %273 = vector.load %arg5[%c0_46, %c0_47] : memref<64x384xf32, #tpu.memory_space<vmem>>, vector<64x384xf32>
    %cst_48 = arith.constant dense<0.000000e+00> : vector<8x384xf32>
    %274 = tpu.matmul %243, %273, %cst_48 {dimension_numbers = #tpu.dot_dimension_numbers<[1], [0], [0], [1], [0, 0, 1, 1], [], []>} : vector<8x64xf32>, vector<64x384xf32>, vector<8x384xf32> -> vector<8x384xf32>
    %c0_49 = arith.constant 0 : index
    %c0_50 = arith.constant 0 : index
    %275 = vector.load %arg6[%c0_49, %c0_50] : memref<1x384xf32, #tpu.memory_space<vmem>>, vector<1x384xf32>
    %276 = vector.broadcast %275 : vector<1x384xf32> to vector<8x384xf32>
    %277 = arith.addf %274, %276 : vector<8x384xf32>
    %c0_51 = arith.constant 0 : index
    %c0_52 = arith.constant 0 : index
    %278 = vector.load %arg12[%c0_51, %c0_52] : memref<8x384xf32, #tpu.memory_space<vmem>>, vector<8x384xf32>
    tpu.vector_store %arg12[%c0_51, %c0_52], %277 {strides = array<i32>} : memref<8x384xf32, #tpu.memory_space<vmem>>, vector<8x384xf32>,
    return
  }
}

</mosaic_0001>

<bundles_post_ra>
// kernel: lstm_cnn_qa_forward.1
= control target key start
LH: loop header
LB: loop body
LE: loop exit
PB: predicated region body
PF: predicated region fallthrough
CT: control target
= control target key end

     0   :  { %18 = vsyncpa [#allocation3], 0  ;;  %s2889_s0 = inlined_call_operand.vmem [shape: s32[64,1], index: 0, kind: input, shape index: {}]   ;;  %s2890_s1 = inlined_call_operand.vmem [shape: s32[64,1], index: 1, kind: input, shape index: {}]   ;;  %s2891_s2 = inlined_call_operand.hbm [shape: f32[256,256], index: 2, kind: input, shape index: {}]   ;;  %s2892_s3 = inlined_call_operand.hbm [shape: f32[64,256], index: 3, kind: input, shape index: {}]   ;;  %s2893_s4 = inlined_call_operand.vmem [shape: f32[1,256], index: 4, kind: input, shape index: {}]   ;;  %s2894_s5 = inlined_call_operand.vmem [shape: f32[64,384], index: 5, kind: input, shape index: {}]   ;;  %s2895_s6 = inlined_call_operand.vmem [shape: f32[1,384], index: 6, kind: input, shape index: {}]   ;;  %s2896_s7 = inlined_call_operand.vmem [shape: f32[64,64], index: 7, kind: input, shape index: {}]   ;;  %s2897_s8 = inlined_call_operand.vmem [shape: f32[1,64], index: 8, kind: input, shape index: {}]   ;;  %s2898_s9 = inlined_call_operand.hbm [shape: f32[64,128], index: 9, kind: input, shape index: {}]   ;;  %s2899_s10 = inlined_call_operand.vmem [shape: f32[1,128], index: 10, kind: input, shape index: {}]   ;;  %s2900_s11 = inlined_call_operand.hbm [shape: f32[2,128], index: 11, kind: output, shape index: {0}]   ;;  %s2901_s12 = inlined_call_operand.vmem [shape: f32[8,384], index: 12, kind: output, shape index: {1}]  }
   0x1   :  { %19 = vsyncpa [#allocation6], 0 }
   0x2   :  { %20 = vsyncpa [#allocation4], 0  ;;  %s2315_s21 = smov [#allocation5]   ;;  %s2316_s23 = smov [#allocation2]  }
   0x3   :  { %s42_s22 = sshll.u32 %s2315_s21, 4  ;;  %s30_s24 = sshll.u32 %s2316_s23, 4  ;;  %s43_s22 = int_to_ptr.vmem [resolvable:$true] %s42_s22  ;;  %s2394_s24 = int_to_ptr.vmem [resolvable:$true] %s30_s24 }
   0x4   :  { %s2221_s27 = scalar_lea.hbm %s2892_s3, 2048 }
   0x5   :  { %p2222_p0 = scmp.ne.s32.totalorder %s2892_s3, %s2221_s27  ;;  %p2225_p1 = scmp.lt.u32.totalorder %s2221_s27, %s2892_s3 }
   0x7   :  { %p2227_p2 = pnand %p2225_p1, %p2222_p0 }
   0x9   :  { %2230 = shalt.err (!%p2227_p2)
}
   0xa   :  { %s2231_s14 = scalar_lea.vmem %s43_s22, 2048  ;;  %p2236_p4 = scmp.lt.s32.totalorder %s43_s22, %s43_s22 }
   0xb   :  { %p2232_p3 = scmp.ne.s32.totalorder %s43_s22, %s2231_s14  ;;  %p2237_p5 = scmp.lt.s32.totalorder %s2231_s14, %s2231_s14 }
   0xd   :  { %p2238_p6 = por %p2237_p5, %p2236_p4 }
   0xf   :  { %p2239_p7 = pnand %p2238_p6, %p2232_p3 }
  0x11   :  { %2242 = shalt.err (!%p2239_p7)
}
  0x12   :  { %s2317_s15 = smov 256   ;;  %s2318_s16 = smov 16  }
  0x13   :  { %48 = dma.hbm_to_vmem [thread:$0]  %s2892_s3, 2048, %s43_s22, [#allocation6], %s2317_s15, %s2317_s15, %s2318_s16  }
  0x14   :  { %s2243_s21 = scalar_lea.hbm %s2891_s2, 8192 }
  0x15   :  { %p2244_p8 = scmp.ne.s32.totalorder %s2891_s2, %s2243_s21  ;;  %p2247_p9 = scmp.lt.u32.totalorder %s2243_s21, %s2891_s2 }
  0x17   :  { %p2249_p10 = pnand %p2247_p9, %p2244_p8 }
  0x19   :  { %2252 = shalt.err (!%p2249_p10)
}
  0x1a   :  { %s2253_s28 = scalar_lea.vmem %s2394_s24, 8192  ;;  %p2258_p12 = scmp.lt.s32.totalorder %s2394_s24, %s2394_s24 }
  0x1b   :  { %p2254_p11 = scmp.ne.s32.totalorder %s2394_s24, %s2253_s28  ;;  %p2259_p13 = scmp.lt.s32.totalorder %s2253_s28, %s2253_s28 }
  0x1d   :  { %p2260_p0 = por %p2259_p13, %p2258_p12 }
  0x1f   :  { %p2261_p1 = pnand %p2260_p0, %p2254_p11 }
  0x21   :  { %2264 = shalt.err (!%p2261_p1)
}
  0x22   :  { %36 = dma.hbm_to_vmem [thread:$0]  %s2891_s2, 8192, %s2394_s24, [#allocation3], %s2317_s15, %s2317_s15, %s2318_s16  }
  0x23   :  { %s2319_s29 = smov [#allocation7]   ;;  %s2265_s17 = scalar_lea.hbm %s2898_s9, 1024 }
  0x24   :  { %s64_s30 = sshll.u32 %s2319_s29, 4  ;;  %p2266_p2 = scmp.ne.s32.totalorder %s2898_s9, %s2265_s17  ;;  %s65_s30 = int_to_ptr.vmem [resolvable:$true] %s64_s30 }
  0x25   :  { %p2269_p3 = scmp.lt.u32.totalorder %s2265_s17, %s2898_s9 }
  0x27   :  { %p2271_p4 = pnand %p2269_p3, %p2266_p2 }
  0x29   :  { %2274 = shalt.err (!%p2271_p4)
}
  0x2a   :  { %s2275_s23 = scalar_lea.vmem %s65_s30, 1024  ;;  %p2280_p6 = scmp.lt.s32.totalorder %s65_s30, %s65_s30 }
  0x2b   :  { %p2276_p5 = scmp.ne.s32.totalorder %s65_s30, %s2275_s23  ;;  %p2281_p7 = scmp.lt.s32.totalorder %s2275_s23, %s2275_s23 }
  0x2d   :  { %p2282_p8 = por %p2281_p7, %p2280_p6 }
  0x2f   :  { %p2283_p9 = pnand %p2282_p8, %p2276_p5 }
  0x31   :  { %2286 = shalt.err (!%p2283_p9)
}
  0x32   :  { %s2320_s2 = smov 128   ;;  %s2321_s24 = smov 8  }
  0x33   :  { %70 = dma.hbm_to_vmem [thread:$0]  %s2898_s9, 1024, %s65_s30, [#allocation6], %s2320_s2, %s2320_s2, %s2321_s24  }
  0x34   :  { %2309 = dma.done.wait [#allocation3], 8192  }
  0x35   :  { %2310 = vsyncadd [#allocation3], 4294959104 }
  0x36   :  { %2311 = dma.done.wait [#allocation6], 3072  }
  0x37   :  { %2312 = vsyncadd [#allocation6], 4294964224  ;;  %v2322_v0 = vmov 0   ;;  %v85_v1 = vld [vmem:[%s2889_s0] sm:$0xff]  ;;  %v214_v3 = vld [vmem:[#allocation2 + $0x8] sm:$0xff]  ;;  %v2323_v21 = vmov 0.0  }
  0x38   :  { %2117 = vset.pattern.permute.xlu0 %v2322_v0  ;;  %2118 = vset.pattern.permute.xlu1 %v2322_v0  ;;  %v133_v2 = vld [vmem:[%s2890_s1] sm:$0xff]  ;;  %v216_v4 = vld [vmem:[#allocation2 + $0x18] sm:$0xff]  ;;  %v215_v7 = vld [vmem:[#allocation2 + $0x10] sm:$0xff]  ;;  %s2325_s30 = smov 64   ;;  %vm407_vm12 = vcmask 523264  }
  0x39   :  { %94 = vperm.xlu0 %2117, %v85_v1   ;;  %v213_v5 = vld [vmem:[#allocation2] sm:$0xff]  ;;  %v1843_v6 = vpack.c.bf16 %v216_v4, %v214_v3  ;;  %v218_v8 = vld [vmem:[#allocation2 + $0x28] sm:$0xff]  ;;  %v220_v9 = vld [vmem:[#allocation2 + $0x38] sm:$0xff]  ;;  %475 = vmatprep.mubr.f32.mxu0 %v2323_v21 }
  0x3a   :  { %v1845_v10 = vpack.c.bf16 %v215_v7, %v213_v5  ;;  %v1847_v11 = vpack.c.bf16 %v220_v9, %v218_v8  ;;  %v217_v12 = vld [vmem:[#allocation2 + $0x20] sm:$0xff]  ;;  %v219_v13 = vld [vmem:[#allocation2 + $0x30] sm:$0xff]  ;;  %v222_v14 = vld [vmem:[#allocation2 + $0x48] sm:$0xff] }
  0x3b   :  { %1844 = vmatprep.subr.bf16.mxu1 %v1843_v6  ;;  %v224_v15 = vld [vmem:[#allocation2 + $0x58] sm:$0xff]  ;;  %v1849_v16 = vpack.c.bf16 %v219_v13, %v217_v12  ;;  %v86_v17 = vld [vmem:[%s2889_s0 + $0x8] sm:$0xff]  ;;  %v221_v19 = vld [vmem:[#allocation2 + $0x40] sm:$0xff] }
  0x3c   :  { %1846 = vmatpush1.bf16.msra.mxu1 %v1845_v10  ;;  %v1851_v18 = vpack.c.bf16 %v224_v15, %v222_v14  ;;  %v223_v20 = vld [vmem:[#allocation2 + $0x50] sm:$0xff]  ;;  %v226_v22 = vld [vmem:[#allocation2 + $0x68] sm:$0xff]  ;;  %v228_v23 = vld [vmem:[#allocation2 + $0x78] sm:$0xff] }
  0x3d   :  { %142 = vperm.xlu0 %2117, %v133_v2   ;;  %1848 = vmatprep.subr.bf16.mxu1 %v1847_v11  ;;  %v1853_v24 = vpack.c.bf16 %v223_v20, %v221_v19  ;;  %v1855_v25 = vpack.c.bf16 %v228_v23, %v226_v22  ;;  %v225_v26 = vld [vmem:[#allocation2 + $0x60] sm:$0xff]  ;;  %v227_v27 = vld [vmem:[#allocation2 + $0x70] sm:$0xff]  ;;  %v230_v28 = vld [vmem:[#allocation2 + $0x88] sm:$0xff] }
  0x3e   :  { %v232_v29 = vld [vmem:[#allocation2 + $0x98] sm:$0xff]  ;;  %v1857_v30 = vpack.c.bf16 %v227_v27, %v225_v26  ;;  %v229_v32 = vld [vmem:[#allocation2 + $0x80] sm:$0xff]  ;;  %v231_v33 = vld [vmem:[#allocation2 + $0x90] sm:$0xff] }
  0x3f   :  { %v1859_v31 = vpack.c.bf16 %v232_v29, %v230_v28  ;;  %v234_v34 = vld [vmem:[#allocation2 + $0xa8] sm:$0xff]  ;;  %v236_v35 = vld [vmem:[#allocation2 + $0xb8] sm:$0xff]  ;;  %v1861_v36 = vpack.c.bf16 %v231_v33, %v229_v32  ;;  %v233_v37 = vld [vmem:[#allocation2 + $0xa0] sm:$0xff] }
  0x40   :  { %1850 = vmatpush1.bf16.msra.mxu1 %v1849_v16  ;;  %v391_v38 = vld [vmem:[#allocation5 + $0x8] sm:$0xff]  ;;  %v393_v39 = vld [vmem:[#allocation5 + $0x18] sm:$0xff]  ;;  %v1863_v40 = vpack.c.bf16 %v236_v35, %v234_v34  ;;  %v235_v41 = vld [vmem:[#allocation2 + $0xb0] sm:$0xff] }
  0x41   :  { %97 = vperm.xlu0 %2117, %v86_v17   ;;  %1852 = vmatprep.subr.bf16.mxu1 %v1851_v18  ;;  %v2447_v42 = vpack.c.bf16 %v393_v39, %v391_v38  ;;  %v390_v43 = vld [vmem:[#allocation5] sm:$0xff]  ;;  %v392_v44 = vld [vmem:[#allocation5 + $0x10] sm:$0xff]  ;;  %v238_v45 = vld [vmem:[#allocation2 + $0xc8] sm:$0xff]  ;;  %v1865_v50 = vpack.c.bf16 %v235_v41, %v233_v37 }
  0x42   :  { %v240_v46 = vld [vmem:[#allocation2 + $0xd8] sm:$0xff]  ;;  %v2449_v47 = vpack.c.bf16 %v392_v44, %v390_v43  ;;  %v395_v48 = vld [vmem:[#allocation5 + $0x28] sm:$0xff]  ;;  %v237_v51 = vld [vmem:[#allocation2 + $0xc0] sm:$0xff] }
  0x43   :  { %1908 = vmatprep.subr.bf16.mxu0 %v2447_v42  ;;  %v397_v49 = vld [vmem:[#allocation5 + $0x38] sm:$0xff]  ;;  %v394_v53 = vld [vmem:[#allocation5 + $0x20] sm:$0xff]  ;;  %v396_v54 = vld [vmem:[#allocation5 + $0x30] sm:$0xff]  ;;  %v1867_v55 = vpack.c.bf16 %v240_v46, %v238_v45 }
  0x44   :  { %1854 = vmatpush1.bf16.msra.mxu1 %v1853_v24  ;;  %1910 = vmatpush1.bf16.msra.mxu0 %v2449_v47  ;;  %v2453_v52 = vpack.c.bf16 %v397_v49, %v395_v48  ;;  %v239_v56 = vld [vmem:[#allocation2 + $0xd0] sm:$0xff]  ;;  %v2455_v57 = vpack.c.bf16 %v396_v54, %v394_v53  ;;  %v399_v58 = vld [vmem:[#allocation5 + $0x48] sm:$0xff]  ;;  %v401_v59 = vld [vmem:[#allocation5 + $0x58] sm:$0xff] }
  0x45   :  { %1856 = vmatprep.subr.bf16.mxu1 %v1855_v25  ;;  %v242_v60 = vld [vmem:[#allocation2 + $0xe8] sm:$0xff]  ;;  %v244_v61 = vld [vmem:[#allocation2 + $0xf8] sm:$0xff]  ;;  %v2458_v62 = vpack.c.bf16 %v401_v59, %v399_v58  ;;  %v398_v63 = vld [vmem:[#allocation5 + $0x40] sm:$0xff]  ;;  %v1869_v1 = vpack.c.bf16 %v239_v56, %v237_v51 }
  0x46   :  { %1912 = vmatprep.subr.bf16.mxu0 %v2453_v52  ;;  %v400_v0 = vld [vmem:[#allocation5 + $0x50] sm:$0xff]  ;;  %v241_v2 = vld [vmem:[#allocation2 + $0xe0] sm:$0xff]  ;;  %v403_v4 = vld [vmem:[#allocation5 + $0x68] sm:$0xff]  ;;  %v1871_v6 = vpack.c.bf16 %v244_v61, %v242_v60 }
  0x47   :  { %v2461_v3 = vpack.c.bf16 %v400_v0, %v398_v63  ;;  %v405_v5 = vld [vmem:[#allocation5 + $0x78] sm:$0xff]  ;;  %v243_v7 = vld [vmem:[#allocation2 + $0xf0] sm:$0xff]  ;;  %v402_v9 = vld [vmem:[#allocation5 + $0x60] sm:$0xff] }
  0x48   :  { %1858 = vmatpush1.bf16.msra.mxu1 %v1857_v30  ;;  %1914 = vmatpush1.bf16.msra.mxu0 %v2455_v57  ;;  %v2464_v8 = vpack.c.bf16 %v405_v5, %v403_v4  ;;  %v404_v10 = vld [vmem:[#allocation5 + $0x70] sm:$0xff]  ;;  %v246_v11 = vld [vmem:[#allocation2 + $0x108] sm:$0xff]  ;;  %v248_v12 = vld [vmem:[#allocation2 + $0x118] sm:$0xff]  ;;  %v1873_v13 = vpack.c.bf16 %v243_v7, %v241_v2  ;;  %v82_v4 = vlaneseq }
  0x49   :  { %1860 = vmatprep.subr.bf16.mxu1 %v1859_v31  ;;  %1916 = vmatprep.subr.bf16.mxu0 %v2458_v62  ;;  %v2467_v14 = vpack.c.bf16 %v404_v10, %v402_v9  ;;  %v1875_v15 = vpack.c.bf16 %v248_v12, %v246_v11  ;;  %v245_v16 = vld [vmem:[#allocation2 + $0x100] sm:$0xff]  ;;  %v247_v17 = vld [vmem:[#allocation2 + $0x110] sm:$0xff]  ;;  %v250_v18 = vld [vmem:[#allocation2 + $0x128] sm:$0xff]  ;;  %v2324_v10 = vmov 1.0  }
  0x4a   :  { %v252_v19 = vld [vmem:[#allocation2 + $0x138] sm:$0xff]  ;;  %v1877_v20 = vpack.c.bf16 %v247_v17, %v245_v16  ;;  %v249_v23 = vld [vmem:[#allocation2 + $0x120] sm:$0xff]  ;;  %v251_v24 = vld [vmem:[#allocation2 + $0x130] sm:$0xff]  ;;  %v2482_v5 = vand.u32 127, %v82_v4 }
  0x4b   :  { %v1879_v22 = vpack.c.bf16 %v252_v19, %v250_v18  ;;  %v254_v25 = vld [vmem:[#allocation2 + $0x148] sm:$0xff]  ;;  %v256_v26 = vld [vmem:[#allocation2 + $0x158] sm:$0xff]  ;;  %v1881_v27 = vpack.c.bf16 %v251_v24, %v249_v23  ;;  %v253_v29 = vld [vmem:[#allocation2 + $0x140] sm:$0xff] }
  0x4c   :  { %1862 = vmatpush1.bf16.msra.mxu1 %v1861_v36  ;;  %1918 = vmatpush1.bf16.msra.mxu0 %v2461_v3  ;;  %v1883_v28 = vpack.c.bf16 %v256_v26, %v254_v25  ;;  %v255_v30 = vld [vmem:[#allocation2 + $0x150] sm:$0xff]  ;;  %v258_v31 = vld [vmem:[#allocation2 + $0x168] sm:$0xff]  ;;  %v260_v32 = vld [vmem:[#allocation2 + $0x178] sm:$0xff]  ;;  %v2485_v7 = vadd.s32 128, %v2482_v5 }
  0x4d   :  { %1864 = vmatprep.subr.bf16.mxu1 %v1863_v40  ;;  %1920 = vmatprep.subr.bf16.mxu0 %v2464_v8  ;;  %v1885_v33 = vpack.c.bf16 %v255_v30, %v253_v29  ;;  %v1887_v34 = vpack.c.bf16 %v260_v32, %v258_v31  ;;  %v257_v35 = vld [vmem:[#allocation2 + $0x160] sm:$0xff]  ;;  %v259_v36 = vld [vmem:[#allocation2 + $0x170] sm:$0xff]  ;;  %v262_v37 = vld [vmem:[#allocation2 + $0x188] sm:$0xff] }
  0x4e   :  { %v264_v38 = vld [vmem:[#allocation2 + $0x198] sm:$0xff]  ;;  %v1889_v39 = vpack.c.bf16 %v259_v36, %v257_v35  ;;  %v261_v41 = vld [vmem:[#allocation2 + $0x180] sm:$0xff]  ;;  %v263_v43 = vld [vmem:[#allocation2 + $0x190] sm:$0xff] }
  0x4f   :  { %v1891_v40 = vpack.c.bf16 %v264_v38, %v262_v37  ;;  %v266_v44 = vld [vmem:[#allocation2 + $0x1a8] sm:$0xff]  ;;  %v268_v45 = vld [vmem:[#allocation2 + $0x1b8] sm:$0xff]  ;;  %v1893_v46 = vpack.c.bf16 %v263_v43, %v261_v41  ;;  %v265_v49 = vld [vmem:[#allocation2 + $0x1a0] sm:$0xff] }
  0x50   :  { %1866 = vmatpush1.bf16.msra.mxu1 %v1865_v50  ;;  %1922 = vmatpush1.bf16.msra.mxu0 %v2467_v14  ;;  %v1895_v48 = vpack.c.bf16 %v268_v45, %v266_v44  ;;  %v267_v50 = vld [vmem:[#allocation2 + $0x1b0] sm:$0xff]  ;;  %v270_v51 = vld [vmem:[#allocation2 + $0x1c8] sm:$0xff]  ;;  %v272_v53 = vld [vmem:[#allocation2 + $0x1d8] sm:$0xff] }
  0x51   :  { %1868 = vmatprep.subr.bf16.mxu1 %v1867_v55  ;;  %1924 = vmatprep.subr.bf16.mxu0 %v2447_v42  ;;  %v1897_v54 = vpack.c.bf16 %v267_v50, %v265_v49  ;;  %v1899_v55 = vpack.c.bf16 %v272_v53, %v270_v51  ;;  %v269_v56 = vld [vmem:[#allocation2 + $0x1c0] sm:$0xff]  ;;  %v271_v58 = vld [vmem:[#allocation2 + $0x1d0] sm:$0xff]  ;;  %v274_v59 = vld [vmem:[#allocation2 + $0x1e8] sm:$0xff] }
  0x52   :  { %v276_v60 = vld [vmem:[#allocation2 + $0x1f8] sm:$0xff]  ;;  %v1901_v61 = vpack.c.bf16 %v271_v58, %v269_v56  ;;  %v273_v0 = vld [vmem:[#allocation2 + $0x1e0] sm:$0xff] }
  0x53   :  { %476 = vmatmul.mubr.f32.vlgmr.msra.gmra.mrb[0].mxu0 %v2323_v21  ;;  %v1903_v63 = vpack.c.bf16 %v276_v60, %v274_v59  ;;  %v406_v16 = vld [vmem:[%s2893_s4] sm:$0x3]  ;;  %v87_v59 = vld [vmem:[%s2889_s0 + $0x10] sm:$0xff] }
  0x54   :  { %1870 = vmatpush1.bf16.msra.mxu1 %v1869_v1  ;;  %1926 = vmatpush1.bf16.msra.mxu0 %v2449_v47  ;;  %v275_v1 = vld [vmem:[#allocation2 + $0x1f0] sm:$0xff] }
  0x55   :  { %1872 = vmatprep.subr.bf16.mxu1 %v1871_v6  ;;  %1928 = vmatprep.subr.bf16.mxu0 %v2453_v52  ;;  %v1905_v2 = vpack.c.bf16 %v275_v1, %v273_v0 }
  0x56   :  { %598 = vmatprep.mubr.f32.mxu0 %v2323_v21 }
  0x58   :  { %1874 = vmatpush1.bf16.msra.mxu1 %v1873_v13  ;;  %1930 = vmatpush1.bf16.msra.mxu0 %v2455_v57  ;;  %v2493_v13 = vshrl.u32 %v82_v4, 7 }
  0x59   :  { %1876 = vmatprep.subr.bf16.mxu1 %v1875_v15  ;;  %1932 = vmatprep.subr.bf16.mxu0 %v2458_v62 }
  0x5a   :  { %v489_v15 = vsub.s32 1, %v2493_v13  ;;  %v485_v25 = vsub.s32 0, %v2493_v13 }
  0x5c   :  { %1878 = vmatpush1.bf16.msra.mxu1 %v1877_v20  ;;  %1934 = vmatpush1.bf16.msra.mxu0 %v2461_v3  ;;  %v2501_v18 = vrot.slane %v406_v16, %v489_v15  ;;  %v2508_v26 = vrot.slane %v406_v16, %v485_v25 }
  0x5d   :  { %1880 = vmatprep.subr.bf16.mxu1 %v1879_v22  ;;  %1936 = vmatprep.subr.bf16.mxu0 %v2464_v8 }
  0x60   :  { %1882 = vmatpush1.bf16.msra.mxu1 %v1881_v27  ;;  %1938 = vmatpush1.bf16.msra.mxu0 %v2467_v14 }
  0x61   :  { %1884 = vmatprep.subr.bf16.mxu1 %v1883_v28  ;;  %1940 = vmatprep.subr.bf16.mxu0 %v2447_v42 }
  0x64   :  { %1886 = vmatpush1.bf16.msra.mxu1 %v1885_v33 }
  0x65   :  { %1888 = vmatprep.subr.bf16.mxu1 %v1887_v34  ;;  %v134_v34 = vld [vmem:[%s2890_s1 + $0x8] sm:$0xff] }
  0x68   :  { %1890 = vmatpush1.bf16.msra.mxu1 %v1889_v39 }
  0x69   :  { %1892 = vmatprep.subr.bf16.mxu1 %v1891_v40 }
  0x6c   :  { %1894 = vmatpush1.bf16.msra.mxu1 %v1893_v46 }
  0x6d   :  { %1896 = vmatprep.subr.bf16.mxu1 %v1895_v48 }
  0x70   :  { %1898 = vmatpush1.bf16.msra.mxu1 %v1897_v54 }
  0x71   :  { %1900 = vmatprep.subr.bf16.mxu1 %v1899_v55 }
  0x74   :  { %1902 = vmatpush1.bf16.msra.mxu1 %v1901_v61 }
  0x75   :  { %1904 = vmatprep.subr.bf16.mxu1 %v1903_v63 }
  0x78   :  { %1906 = vmatpush1.bf16.msra.mxu1 %v1905_v2 }
  0xb8   :  { %v95_v6 = vpop.permute.xlu0 %94 }
  0xb9   :  { %vm117_vm0 = vcmp.eq.s32.totalorder %v95_v6, %v2482_v5  ;;  %vm118_vm4 = vcmp.eq.s32.totalorder %v95_v6, %v2485_v7  ;;  %v135_v6 = vld [vmem:[%s2890_s1 + $0x10] sm:$0xff] }
  0xbc   :  { %v143_v9 = vpop.permute.xlu0 %142 }
  0xbd   :  { %vm165_vm1 = vcmp.eq.s32.totalorder %v143_v9, %v2482_v5  ;;  %vm166_vm2 = vcmp.eq.s32.totalorder %v143_v9, %v2485_v7 }
  0xbe   :  { %vm181_vm3 = vmor %vm117_vm0, %vm165_vm1 }
  0xbf   :  { %vm182_vm5 = vmor %vm118_vm4, %vm166_vm2 }
  0xc0   :  { %1713 = vmatprep.mubr.msk.f32.mxu1 %vm182_vm5, %v2324_v10  ;;  %v98_v39 = vpop.permute.xlu0 %97 }
  0xc1   :  { %1714 = vmatmul.mubr.msk.f32.vlgmr.msra.gmra.mrb[0].mxu1 %vm181_vm3, %v2324_v10  ;;  %vm119_vm6 = vcmp.eq.s32.totalorder %v98_v39, %v2482_v5  ;;  %vm120_vm9 = vcmp.eq.s32.totalorder %v98_v39, %v2485_v7 }
 0x126   :  { %v477_v11 = vpop.f32.mrb[0].mxu0 }
 0x127   :  { %v479_v12 = vpop.f32.mrb[1].mxu0 }
 0x194   :  { %v343_v17 = vpop.f32.mrb[0].mxu1 }
 0x195   :  { %v478_v19 = vadd.f32 %v477_v11, %v343_v17  ;;  %v345_v20 = vpop.f32.mrb[1].mxu1 }
 0x196   :  { %v480_v22 = vadd.f32 %v479_v12, %v345_v20 }
 0x197   :  { %v493_v27 = vadd.f32 %v2508_v26, %v478_v19 }
 0x198   :  { %v494_v23 = vadd.f32 %v2501_v18, %v480_v22 }
 0x199   :  { %v1729_v28 = vmul.f32 -1.442695, %v493_v27 }
 0x19a   :  { %2119 = vtanh.f32 %v494_v23  ;;  %v1730_v41 = vmul.f32 -1.442695, %v494_v23 }
 0x19b   :  { %2121 = vpow2.f32 %v1729_v28 }
 0x1a4   :  { %v2120_v24 = vpop.eup %2119 }
 0x1a5   :  { %510 = vrot.lane.b32.xlu1 %v2120_v24, %s2325_s30  ;;  %v2122_v29 = vpop.eup %2121 }
 0x1a6   :  { %v501_v30 = vadd.f32 1.0, %v2122_v29 }
 0x1a8   :  { %2123 = vrcp.f32 %v501_v30 }
 0x1b2   :  { %v2124_v31 = vpop.eup %2123 }
 0x1b3   :  { %v508_v35 = vmul.f32 0.0, %v2124_v31 }
 0x217   :  { %v511_v32 = vpop.permute.xlu1 %510 }
 0x218   :  { %v513_v33 = vmul.f32 %v2124_v31, %v511_v32 }
 0x21a   :  { %515 = vrot.lane.b32.xlu1 %v513_v33, %s2325_s30 }
 0x21e   :  { %145 = vperm.xlu1 %2118, %v134_v34  }
 0x28c   :  { %v516_v36 = vpop.permute.xlu1 %515 }
 0x28d   :  { %v518_v37 = vadd.f32 %v516_v36, %v508_v35 }
 0x28f   :  { %2125 = vtanh.f32 %v518_v37 }
 0x290   :  { %2127 = vpow2.f32 %v1730_v41 }
 0x299   :  { %v2126_v38 = vpop.eup %2125 }
 0x29a   :  { %521 = vrot.lane.b32.xlu0 %v2126_v38, %s2325_s30  ;;  %v2128_v43 = vpop.eup %2127 }
 0x29b   :  { %v502_v44 = vadd.f32 1.0, %v2128_v43 }
 0x29d   :  { %v146_v40 = vpop.permute.xlu1 %145  ;;  %2129 = vrcp.f32 %v502_v44 }
 0x29e   :  { %vm167_vm7 = vcmp.eq.s32.totalorder %v146_v40, %v2482_v5  ;;  %vm168_vm8 = vcmp.eq.s32.totalorder %v146_v40, %v2485_v7 }
 0x29f   :  { %vm183_vm10 = vmor %vm119_vm6, %vm167_vm7 }
 0x2a0   :  { %vm184_vm11 = vmor %vm120_vm9, %vm168_vm8 }
 0x2a1   :  { %1715 = vmatprep.mubr.msk.f32.mxu1 %vm184_vm11, %v2324_v10 }
 0x2a2   :  { %1716 = vmatmul.mubr.msk.f32.gmra.mrb[2].mxu1 %vm183_vm10, %v2324_v10 }
 0x2a7   :  { %v2130_v45 = vpop.eup %2129 }
 0x30c   :  { %v522_v46 = vpop.permute.xlu0 %521 }
 0x30d   :  { %v2522_v48 = vmul.f32 %v2130_v45, %v522_v46  ;;  %v88_v46 = vld [vmem:[%s2889_s0 + $0x18] sm:$0xff] }
 0x30f   :  { %1731 = vmatmul.mubr.msk.f32.vlgmr.msra.gmra.mrb[2].mxu0 %vm407_vm12, %v2522_v48  ;;  %v526_v28 = vrot.slane %v2522_v48, 2  ;;  %v530_v30 = vmul.f32 %v2522_v48, %v2522_v48 }
 0x310   :  { %1942 = vmatpush1.bf16.msra.mxu0 %v2449_v47  ;;  %710 = vmatprep.mubr.f32.mxu0 %v2323_v21 }
 0x311   :  { %1944 = vmatprep.subr.bf16.mxu0 %v2453_v52  ;;  %v528_v33 = vmul.f32 %v526_v28, %v2522_v48 }
 0x314   :  { %1946 = vmatpush1.bf16.msra.mxu0 %v2455_v57 }
 0x315   :  { %1948 = vmatprep.subr.bf16.mxu0 %v2458_v62 }
 0x318   :  { %1950 = vmatpush1.bf16.msra.mxu0 %v2461_v3 }
 0x319   :  { %1952 = vmatprep.subr.bf16.mxu0 %v2464_v8 }
 0x31c   :  { %1954 = vmatpush1.bf16.msra.mxu0 %v2467_v14 }
 0x31d   :  { %1956 = vmatprep.subr.bf16.mxu0 %v2447_v42 }
 0x375   :  { %v349_v49 = vpop.f32.mrb[2].mxu1 }
 0x376   :  { %v351_v50 = vpop.f32.mrb[3].mxu1 }
 0x3e2   :  { %v600_v51 = vpop.f32.mrb[2].mxu0 }
 0x3e3   :  { %v601_v53 = vadd.f32 %v600_v51, %v349_v49  ;;  %v602_v54 = vpop.f32.mrb[3].mxu0 }
 0x3e4   :  { %v603_v55 = vadd.f32 %v602_v54, %v351_v50 }
 0x3e5   :  { %v605_v60 = vadd.f32 %v601_v53, %v2508_v26 }
 0x3e6   :  { %v606_v56 = vadd.f32 %v603_v55, %v2501_v18 }
 0x3e7   :  { %v1732_v61 = vmul.f32 -1.442695, %v605_v60 }
 0x3e8   :  { %2131 = vtanh.f32 %v606_v56  ;;  %v1733_v20 = vmul.f32 -1.442695, %v606_v56  ;;  %v136_v56 = vld [vmem:[%s2890_s1 + $0x18] sm:$0xff] }
 0x3e9   :  { %2133 = vpow2.f32 %v1732_v61 }
 0x3f2   :  { %v2132_v58 = vpop.eup %2131 }
 0x3f3   :  { %622 = vrot.lane.b32.xlu1 %v2132_v58, %s2325_s30  ;;  %v2134_v63 = vpop.eup %2133 }
 0x3f4   :  { %v613_v0 = vadd.f32 1.0, %v2134_v63 }
 0x3f6   :  { %2135 = vrcp.f32 %v613_v0 }
 0x3f7   :  { %100 = vperm.xlu1 %2118, %v87_v59  }
 0x400   :  { %v2136_v1 = vpop.eup %2135 }
 0x401   :  { %v620_v9 = vmul.f32 %v2136_v1, %v518_v37 }
 0x465   :  { %v623_v2 = vpop.permute.xlu1 %622 }
 0x466   :  { %v625_v4 = vmul.f32 %v2136_v1, %v623_v2 }
 0x468   :  { %627 = vrot.lane.b32.xlu0 %v625_v4, %s2325_s30 }
 0x46c   :  { %148 = vperm.xlu0 %2117, %v135_v6  }
 0x476   :  { %v101_v17 = vpop.permute.xlu1 %100 }
 0x477   :  { %vm121_vm13 = vcmp.eq.s32.totalorder %v101_v17, %v2482_v5  ;;  %vm122_vm0 = vcmp.eq.s32.totalorder %v101_v17, %v2485_v7 }
 0x4da   :  { %v628_v11 = vpop.permute.xlu0 %627 }
 0x4db   :  { %v2545_v12 = vadd.f32 %v628_v11, %v620_v9 }
 0x4dd   :  { %2137 = vtanh.f32 %v2545_v12 }
 0x4de   :  { %2139 = vpow2.f32 %v1733_v20 }
 0x4e7   :  { %v2138_v16 = vpop.eup %2137 }
 0x4e8   :  { %633 = vrot.lane.b32.xlu1 %v2138_v16, %s2325_s30  ;;  %v2140_v22 = vpop.eup %2139 }
 0x4e9   :  { %v614_v23 = vadd.f32 1.0, %v2140_v22 }
 0x4eb   :  { %v149_v19 = vpop.permute.xlu0 %148  ;;  %2141 = vrcp.f32 %v614_v23 }
 0x4ec   :  { %vm169_vm14 = vcmp.eq.s32.totalorder %v149_v19, %v2482_v5  ;;  %vm170_vm15 = vcmp.eq.s32.totalorder %v149_v19, %v2485_v7 }
 0x4ed   :  { %vm185_vm1 = vmor %vm121_vm13, %vm169_vm14 }
 0x4ee   :  { %vm186_vm2 = vmor %vm122_vm0, %vm170_vm15 }
 0x4ef   :  { %1717 = vmatprep.mubr.msk.f32.mxu1 %vm186_vm2, %v2324_v10 }
 0x4f0   :  { %1718 = vmatmul.mubr.msk.f32.gmra.mrb[4].mxu1 %vm185_vm1, %v2324_v10 }
 0x4f5   :  { %v2142_v24 = vpop.eup %2141 }
 0x55a   :  { %v634_v27 = vpop.permute.xlu1 %633 }
 0x55b   :  { %v636_v29 = vmul.f32 %v2142_v24, %v634_v27 }
 0x55d   :  { %v638_v31 = vrot.slane %v636_v29, 2  ;;  %v642_v32 = vmul.f32 %v636_v29, %v636_v29  ;;  %1734 = vmatmul.mubr.msk.f32.vlgmr.msra.gmra.mrb[4].mxu0 %vm407_vm12, %v636_v29 }
 0x55e   :  { %1958 = vmatpush1.bf16.msra.mxu0 %v2449_v47  ;;  %822 = vmatprep.mubr.f32.mxu0 %v2323_v21 }
 0x55f   :  { %v640_v34 = vmul.f32 %v638_v31, %v636_v29  ;;  %v2562_v35 = vadd.f32 %v642_v32, %v530_v30  ;;  %1960 = vmatprep.subr.bf16.mxu0 %v2453_v52  ;;  %v89_v32 = vld [vmem:[%s2889_s0 + $0x20] sm:$0xff] }
 0x561   :  { %v2565_v36 = vadd.f32 %v640_v34, %v528_v33 }
 0x562   :  { %1962 = vmatpush1.bf16.msra.mxu0 %v2455_v57 }
 0x563   :  { %1964 = vmatprep.subr.bf16.mxu0 %v2458_v62 }
 0x566   :  { %1966 = vmatpush1.bf16.msra.mxu0 %v2461_v3 }
 0x567   :  { %1968 = vmatprep.subr.bf16.mxu0 %v2464_v8 }
 0x56a   :  { %1970 = vmatpush1.bf16.msra.mxu0 %v2467_v14 }
 0x56b   :  { %1972 = vmatprep.subr.bf16.mxu0 %v2447_v42 }
 0x5c3   :  { %v355_v37 = vpop.f32.mrb[4].mxu1 }
 0x5c4   :  { %v357_v38 = vpop.f32.mrb[5].mxu1 }
 0x630   :  { %v712_v39 = vpop.f32.mrb[4].mxu0 }
 0x631   :  { %v713_v40 = vadd.f32 %v712_v39, %v355_v37  ;;  %v714_v41 = vpop.f32.mrb[5].mxu0 }
 0x632   :  { %v715_v43 = vadd.f32 %v714_v41, %v357_v38 }
 0x633   :  { %v717_v48 = vadd.f32 %v713_v40, %v2508_v26  ;;  %v137_v40 = vld [vmem:[%s2890_s1 + $0x20] sm:$0xff] }
 0x634   :  { %v718_v44 = vadd.f32 %v715_v43, %v2501_v18 }
 0x635   :  { %v1735_v49 = vmul.f32 -1.442695, %v717_v48 }
 0x636   :  { %2143 = vtanh.f32 %v718_v44  ;;  %v1736_v1 = vmul.f32 -1.442695, %v718_v44 }
 0x637   :  { %2145 = vpow2.f32 %v1735_v49 }
 0x640   :  { %v2144_v45 = vpop.eup %2143 }
 0x641   :  { %734 = vrot.lane.b32.xlu0 %v2144_v45, %s2325_s30  ;;  %v2146_v50 = vpop.eup %2145 }
 0x642   :  { %v725_v51 = vadd.f32 1.0, %v2146_v50 }
 0x644   :  { %2147 = vrcp.f32 %v725_v51 }
 0x645   :  { %103 = vperm.xlu0 %2117, %v88_v46  }
 0x64e   :  { %v2148_v53 = vpop.eup %2147 }
 0x64f   :  { %v732_v58 = vmul.f32 %v2148_v53, %v2545_v12 }
 0x6b3   :  { %v735_v54 = vpop.permute.xlu0 %734 }
 0x6b4   :  { %v737_v55 = vmul.f32 %v2148_v53, %v735_v54 }
 0x6b6   :  { %739 = vrot.lane.b32.xlu1 %v737_v55, %s2325_s30 }
 0x6ba   :  { %151 = vperm.xlu1 %2118, %v136_v56  }
 0x6c4   :  { %v104_v63 = vpop.permute.xlu0 %103 }
 0x6c5   :  { %vm123_vm3 = vcmp.eq.s32.totalorder %v104_v63, %v2482_v5  ;;  %vm124_vm6 = vcmp.eq.s32.totalorder %v104_v63, %v2485_v7 }
 0x728   :  { %v740_v59 = vpop.permute.xlu1 %739 }
 0x729   :  { %v742_v60 = vadd.f32 %v740_v59, %v732_v58 }
 0x72b   :  { %2149 = vtanh.f32 %v742_v60 }
 0x72c   :  { %2151 = vpow2.f32 %v1736_v1 }
 0x735   :  { %v2150_v61 = vpop.eup %2149 }
 0x736   :  { %745 = vrot.lane.b32.xlu0 %v2150_v61, %s2325_s30  ;;  %v2152_v2 = vpop.eup %2151 }
 0x737   :  { %v726_v4 = vadd.f32 1.0, %v2152_v2 }
 0x739   :  { %v152_v0 = vpop.permute.xlu1 %151  ;;  %2153 = vrcp.f32 %v726_v4 }
 0x73a   :  { %vm171_vm4 = vcmp.eq.s32.totalorder %v152_v0, %v2482_v5  ;;  %vm172_vm5 = vcmp.eq.s32.totalorder %v152_v0, %v2485_v7 }
 0x73b   :  { %vm187_vm7 = vmor %vm123_vm3, %vm171_vm4 }
 0x73c   :  { %vm188_vm8 = vmor %vm124_vm6, %vm172_vm5 }
 0x73d   :  { %1719 = vmatprep.mubr.msk.f32.mxu1 %vm188_vm8, %v2324_v10 }
 0x73e   :  { %1720 = vmatmul.mubr.msk.f32.gmra.mrb[6].mxu1 %vm187_vm7, %v2324_v10 }
 0x743   :  { %v2154_v6 = vpop.eup %2153 }
 0x7a8   :  { %v746_v9 = vpop.permute.xlu0 %745 }
 0x7a9   :  { %v748_v11 = vmul.f32 %v2154_v6, %v746_v9 }
 0x7ab   :  { %v750_v12 = vrot.slane %v748_v11, 2  ;;  %v754_v16 = vmul.f32 %v748_v11, %v748_v11  ;;  %1737 = vmatmul.mubr.msk.f32.vlgmr.msra.gmra.mrb[6].mxu0 %vm407_vm12, %v748_v11 }
 0x7ac   :  { %1974 = vmatpush1.bf16.msra.mxu0 %v2449_v47  ;;  %934 = vmatprep.mubr.f32.mxu0 %v2323_v21 }
 0x7ad   :  { %v752_v17 = vmul.f32 %v750_v12, %v748_v11  ;;  %v2595_v19 = vadd.f32 %v754_v16, %v2562_v35  ;;  %1976 = vmatprep.subr.bf16.mxu0 %v2453_v52  ;;  %v90_v12 = vld [vmem:[%s2889_s0 + $0x28] sm:$0xff] }
 0x7af   :  { %v2599_v20 = vadd.f32 %v752_v17, %v2565_v36 }
 0x7b0   :  { %1978 = vmatpush1.bf16.msra.mxu0 %v2455_v57 }
 0x7b1   :  { %1980 = vmatprep.subr.bf16.mxu0 %v2458_v62 }
 0x7b4   :  { %1982 = vmatpush1.bf16.msra.mxu0 %v2461_v3 }
 0x7b5   :  { %1984 = vmatprep.subr.bf16.mxu0 %v2464_v8 }
 0x7b8   :  { %1986 = vmatpush1.bf16.msra.mxu0 %v2467_v14 }
 0x7b9   :  { %1988 = vmatprep.subr.bf16.mxu0 %v2447_v42 }
 0x811   :  { %v361_v22 = vpop.f32.mrb[6].mxu1 }
 0x812   :  { %v363_v23 = vpop.f32.mrb[7].mxu1 }
 0x87e   :  { %v824_v24 = vpop.f32.mrb[6].mxu0 }
 0x87f   :  { %v825_v27 = vadd.f32 %v824_v24, %v361_v22  ;;  %v826_v28 = vpop.f32.mrb[7].mxu0 }
 0x880   :  { %v827_v29 = vadd.f32 %v826_v28, %v363_v23 }
 0x881   :  { %v829_v33 = vadd.f32 %v825_v27, %v2508_v26  ;;  %v138_v27 = vld [vmem:[%s2890_s1 + $0x28] sm:$0xff] }
 0x882   :  { %v830_v30 = vadd.f32 %v827_v29, %v2501_v18 }
 0x883   :  { %v1738_v34 = vmul.f32 -1.442695, %v829_v33 }
 0x884   :  { %2155 = vtanh.f32 %v830_v30  ;;  %v1739_v49 = vmul.f32 -1.442695, %v830_v30 }
 0x885   :  { %2157 = vpow2.f32 %v1738_v34 }
 0x88e   :  { %v2156_v31 = vpop.eup %2155 }
 0x88f   :  { %846 = vrot.lane.b32.xlu1 %v2156_v31, %s2325_s30  ;;  %v2158_v35 = vpop.eup %2157 }
 0x890   :  { %v837_v36 = vadd.f32 1.0, %v2158_v35 }
 0x892   :  { %2159 = vrcp.f32 %v837_v36 }
 0x893   :  { %106 = vperm.xlu1 %2118, %v89_v32  }
 0x89c   :  { %v2160_v37 = vpop.eup %2159 }
 0x89d   :  { %v844_v41 = vmul.f32 %v2160_v37, %v742_v60 }
 0x901   :  { %v847_v38 = vpop.permute.xlu1 %846 }
 0x902   :  { %v849_v39 = vmul.f32 %v2160_v37, %v847_v38 }
 0x904   :  { %851 = vrot.lane.b32.xlu0 %v849_v39, %s2325_s30 }
 0x908   :  { %154 = vperm.xlu0 %2117, %v137_v40  }
 0x912   :  { %v107_v46 = vpop.permute.xlu1 %106 }
 0x913   :  { %vm125_vm9 = vcmp.eq.s32.totalorder %v107_v46, %v2482_v5  ;;  %vm126_vm13 = vcmp.eq.s32.totalorder %v107_v46, %v2485_v7 }
 0x976   :  { %v852_v43 = vpop.permute.xlu0 %851 }
 0x977   :  { %v854_v44 = vadd.f32 %v852_v43, %v844_v41 }
 0x979   :  { %2161 = vtanh.f32 %v854_v44 }
 0x97a   :  { %2163 = vpow2.f32 %v1739_v49 }
 0x983   :  { %v2162_v45 = vpop.eup %2161 }
 0x984   :  { %857 = vrot.lane.b32.xlu1 %v2162_v45, %s2325_s30  ;;  %v2164_v50 = vpop.eup %2163 }
 0x985   :  { %v838_v51 = vadd.f32 1.0, %v2164_v50 }
 0x987   :  { %v155_v48 = vpop.permute.xlu0 %154  ;;  %2165 = vrcp.f32 %v838_v51 }
 0x988   :  { %vm173_vm10 = vcmp.eq.s32.totalorder %v155_v48, %v2482_v5  ;;  %vm174_vm11 = vcmp.eq.s32.totalorder %v155_v48, %v2485_v7 }
 0x989   :  { %vm189_vm14 = vmor %vm125_vm9, %vm173_vm10 }
 0x98a   :  { %vm190_vm15 = vmor %vm126_vm13, %vm174_vm11 }
 0x98b   :  { %1721 = vmatprep.mubr.msk.f32.mxu1 %vm190_vm15, %v2324_v10 }
 0x98c   :  { %1722 = vmatmul.mubr.msk.f32.gmra.mrb[8].mxu1 %vm189_vm14, %v2324_v10 }
 0x991   :  { %v2166_v53 = vpop.eup %2165 }
 0x9f6   :  { %v858_v54 = vpop.permute.xlu1 %857 }
 0x9f7   :  { %v860_v55 = vmul.f32 %v2166_v53, %v858_v54 }
 0x9f9   :  { %v862_v56 = vrot.slane %v860_v55, 2  ;;  %v866_v58 = vmul.f32 %v860_v55, %v860_v55  ;;  %1740 = vmatmul.mubr.msk.f32.vlgmr.msra.gmra.mrb[8].mxu0 %vm407_vm12, %v860_v55 }
 0x9fa   :  { %1990 = vmatpush1.bf16.msra.mxu0 %v2449_v47  ;;  %1046 = vmatprep.mubr.f32.mxu0 %v2323_v21 }
 0x9fb   :  { %v864_v59 = vmul.f32 %v862_v56, %v860_v55  ;;  %v2628_v60 = vadd.f32 %v866_v58, %v2595_v19  ;;  %1992 = vmatprep.subr.bf16.mxu0 %v2453_v52  ;;  %v91_v56 = vld [vmem:[%s2889_s0 + $0x30] sm:$0xff] }
 0x9fd   :  { %v2632_v61 = vadd.f32 %v864_v59, %v2599_v20 }
 0x9fe   :  { %1994 = vmatpush1.bf16.msra.mxu0 %v2455_v57 }
 0x9ff   :  { %1996 = vmatprep.subr.bf16.mxu0 %v2458_v62 }
 0xa02   :  { %1998 = vmatpush1.bf16.msra.mxu0 %v2461_v3 }
 0xa03   :  { %2000 = vmatprep.subr.bf16.mxu0 %v2464_v8 }
 0xa06   :  { %2002 = vmatpush1.bf16.msra.mxu0 %v2467_v14 }
 0xa07   :  { %2004 = vmatprep.subr.bf16.mxu0 %v2447_v42 }
 0xa5f   :  { %v367_v63 = vpop.f32.mrb[8].mxu1 }
 0xa60   :  { %v369_v0 = vpop.f32.mrb[9].mxu1 }
 0xacc   :  { %v936_v1 = vpop.f32.mrb[8].mxu0 }
 0xacd   :  { %v937_v2 = vadd.f32 %v936_v1, %v367_v63  ;;  %v938_v4 = vpop.f32.mrb[9].mxu0  ;;  %v139_v1 = vld [vmem:[%s2890_s1 + $0x30] sm:$0xff] }
 0xace   :  { %v939_v6 = vadd.f32 %v938_v4, %v369_v0 }
 0xacf   :  { %v941_v16 = vadd.f32 %v937_v2, %v2508_v26 }
 0xad0   :  { %v942_v9 = vadd.f32 %v939_v6, %v2501_v18 }
 0xad1   :  { %v1741_v17 = vmul.f32 -1.442695, %v941_v16 }
 0xad2   :  { %2167 = vtanh.f32 %v942_v9  ;;  %v1742_v34 = vmul.f32 -1.442695, %v942_v9 }
 0xad3   :  { %2169 = vpow2.f32 %v1741_v17 }
 0xadc   :  { %v2168_v11 = vpop.eup %2167 }
 0xadd   :  { %958 = vrot.lane.b32.xlu0 %v2168_v11, %s2325_s30  ;;  %v2170_v19 = vpop.eup %2169 }
 0xade   :  { %v949_v20 = vadd.f32 1.0, %v2170_v19 }
 0xae0   :  { %2171 = vrcp.f32 %v949_v20 }
 0xae1   :  { %109 = vperm.xlu0 %2117, %v90_v12  }
 0xaea   :  { %v2172_v22 = vpop.eup %2171 }
 0xaeb   :  { %v956_v28 = vmul.f32 %v2172_v22, %v854_v44 }
 0xb4f   :  { %v959_v23 = vpop.permute.xlu0 %958 }
 0xb50   :  { %v961_v24 = vmul.f32 %v2172_v22, %v959_v23 }
 0xb52   :  { %963 = vrot.lane.b32.xlu1 %v961_v24, %s2325_s30 }
 0xb56   :  { %157 = vperm.xlu1 %2118, %v138_v27  }
 0xb60   :  { %v110_v32 = vpop.permute.xlu0 %109 }
 0xb61   :  { %vm127_vm0 = vcmp.eq.s32.totalorder %v110_v32, %v2482_v5  ;;  %vm128_vm3 = vcmp.eq.s32.totalorder %v110_v32, %v2485_v7 }
 0xbc4   :  { %v964_v29 = vpop.permute.xlu1 %963 }
 0xbc5   :  { %v966_v30 = vadd.f32 %v964_v29, %v956_v28 }
 0xbc7   :  { %2173 = vtanh.f32 %v966_v30 }
 0xbc8   :  { %2175 = vpow2.f32 %v1742_v34 }
 0xbd1   :  { %v2174_v31 = vpop.eup %2173 }
 0xbd2   :  { %969 = vrot.lane.b32.xlu0 %v2174_v31, %s2325_s30  ;;  %v2176_v35 = vpop.eup %2175 }
 0xbd3   :  { %v950_v36 = vadd.f32 1.0, %v2176_v35 }
 0xbd5   :  { %v158_v33 = vpop.permute.xlu1 %157  ;;  %2177 = vrcp.f32 %v950_v36 }
 0xbd6   :  { %vm175_vm1 = vcmp.eq.s32.totalorder %v158_v33, %v2482_v5  ;;  %vm176_vm2 = vcmp.eq.s32.totalorder %v158_v33, %v2485_v7 }
 0xbd7   :  { %vm191_vm4 = vmor %vm127_vm0, %vm175_vm1 }
 0xbd8   :  { %vm192_vm5 = vmor %vm128_vm3, %vm176_vm2  ;;  %vm2327_vm3 = vmmov 0  }
 0xbd9   :  { %1723 = vmatprep.mubr.msk.f32.mxu1 %vm192_vm5, %v2324_v10 }
 0xbda   :  { %1724 = vmatmul.mubr.msk.f32.gmra.mrb[10].mxu1 %vm191_vm4, %v2324_v10 }
 0xbdf   :  { %v2178_v37 = vpop.eup %2177 }
 0xc44   :  { %v970_v38 = vpop.permute.xlu0 %969 }
 0xc45   :  { %v972_v39 = vmul.f32 %v2178_v37, %v970_v38 }
 0xc47   :  { %v974_v40 = vrot.slane %v972_v39, 2  ;;  %v978_v41 = vmul.f32 %v972_v39, %v972_v39  ;;  %1743 = vmatmul.mubr.msk.f32.vlgmr.msra.gmra.mrb[10].mxu0 %vm407_vm12, %v972_v39 }
 0xc48   :  { %2006 = vmatpush1.bf16.msra.mxu0 %v2449_v47  ;;  %1158 = vmatprep.mubr.f32.mxu0 %v2323_v21 }
 0xc49   :  { %v976_v43 = vmul.f32 %v974_v40, %v972_v39  ;;  %v2661_v44 = vadd.f32 %v978_v41, %v2628_v60  ;;  %2008 = vmatprep.subr.bf16.mxu0 %v2453_v52  ;;  %v140_v40 = vld [vmem:[%s2890_s1 + $0x38] sm:$0xff] }
 0xc4b   :  { %v2665_v45 = vadd.f32 %v976_v43, %v2632_v61 }
 0xc4c   :  { %2010 = vmatpush1.bf16.msra.mxu0 %v2455_v57 }
 0xc4d   :  { %2012 = vmatprep.subr.bf16.mxu0 %v2458_v62 }
 0xc50   :  { %2014 = vmatpush1.bf16.msra.mxu0 %v2461_v3 }
 0xc51   :  { %2016 = vmatprep.subr.bf16.mxu0 %v2464_v8 }
 0xc54   :  { %2018 = vmatpush1.bf16.msra.mxu0 %v2467_v14 }
 0xc55   :  { %2020 = vmatprep.subr.bf16.mxu0 %v2447_v42 }
 0xcad   :  { %v373_v46 = vpop.f32.mrb[10].mxu1 }
 0xcae   :  { %v375_v48 = vpop.f32.mrb[11].mxu1 }
 0xd1a   :  { %v1048_v49 = vpop.f32.mrb[10].mxu0 }
 0xd1b   :  { %v1049_v50 = vadd.f32 %v1048_v49, %v373_v46  ;;  %v1050_v51 = vpop.f32.mrb[11].mxu0 }
 0xd1c   :  { %v1051_v53 = vadd.f32 %v1050_v51, %v375_v48 }
 0xd1d   :  { %v1053_v58 = vadd.f32 %v1049_v50, %v2508_v26 }
 0xd1e   :  { %v1054_v54 = vadd.f32 %v1051_v53, %v2501_v18 }
 0xd1f   :  { %v1744_v42 = vmul.f32 -1.442695, %v1053_v58 }
 0xd20   :  { %2179 = vtanh.f32 %v1054_v54  ;;  %v1745_v16 = vmul.f32 -1.442695, %v1054_v54 }
 0xd21   :  { %2181 = vpow2.f32 %v1744_v42 }
 0xd2a   :  { %v2180_v55 = vpop.eup %2179 }
 0xd2b   :  { %1070 = vrot.lane.b32.xlu1 %v2180_v55, %s2325_s30  ;;  %v2182_v59 = vpop.eup %2181 }
 0xd2c   :  { %v1061_v60 = vadd.f32 1.0, %v2182_v59 }
 0xd2e   :  { %2183 = vrcp.f32 %v1061_v60 }
 0xd2f   :  { %112 = vperm.xlu1 %2118, %v91_v56  }
 0xd38   :  { %v2184_v61 = vpop.eup %2183 }
 0xd39   :  { %v1068_v2 = vmul.f32 %v2184_v61, %v966_v30 }
 0xd9d   :  { %v1071_v63 = vpop.permute.xlu1 %1070 }
 0xd9e   :  { %v1073_v0 = vmul.f32 %v2184_v61, %v1071_v63 }
 0xda0   :  { %1075 = vrot.lane.b32.xlu0 %v1073_v0, %s2325_s30 }
 0xda4   :  { %160 = vperm.xlu0 %2117, %v139_v1  }
 0xdae   :  { %v113_v11 = vpop.permute.xlu1 %112 }
 0xdaf   :  { %vm129_vm6 = vcmp.eq.s32.totalorder %v113_v11, %v2482_v5  ;;  %vm130_vm9 = vcmp.eq.s32.totalorder %v113_v11, %v2485_v7 }
 0xe12   :  { %v1076_v4 = vpop.permute.xlu0 %1075 }
 0xe13   :  { %v1078_v6 = vadd.f32 %v1076_v4, %v1068_v2 }
 0xe15   :  { %2185 = vtanh.f32 %v1078_v6 }
 0xe16   :  { %2187 = vpow2.f32 %v1745_v16 }
 0xe1f   :  { %v2186_v9 = vpop.eup %2185 }
 0xe20   :  { %1081 = vrot.lane.b32.xlu1 %v2186_v9, %s2325_s30  ;;  %v2188_v17 = vpop.eup %2187 }
 0xe21   :  { %v1062_v19 = vadd.f32 1.0, %v2188_v17 }
 0xe23   :  { %v161_v12 = vpop.permute.xlu0 %160  ;;  %2189 = vrcp.f32 %v1062_v19  ;;  %v1324_v19 = vld [vmem:[%s2896_s7 + $0x8] sm:$0xff] }
 0xe24   :  { %vm177_vm7 = vcmp.eq.s32.totalorder %v161_v12, %v2482_v5  ;;  %vm178_vm8 = vcmp.eq.s32.totalorder %v161_v12, %v2485_v7 }
 0xe25   :  { %vm193_vm10 = vmor %vm129_vm6, %vm177_vm7 }
 0xe26   :  { %vm194_vm11 = vmor %vm130_vm9, %vm178_vm8 }
 0xe27   :  { %1725 = vmatprep.mubr.msk.f32.mxu1 %vm194_vm11, %v2324_v10 }
 0xe28   :  { %1726 = vmatmul.mubr.msk.f32.gmra.mrb[12].mxu1 %vm193_vm10, %v2324_v10 }
 0xe2d   :  { %v2190_v20 = vpop.eup %2189 }
 0xe92   :  { %v1082_v22 = vpop.permute.xlu1 %1081 }
 0xe93   :  { %v1084_v23 = vmul.f32 %v2190_v20, %v1082_v22  ;;  %v2326_v20 = vmov 0.0|0.0  }
 0xe94   :  { %2035 = vmatprep.subr.bf16.mxu1 %v2326_v20 }
 0xe95   :  { %v1086_v24 = vrot.slane %v1084_v23, 2  ;;  %v1090_v27 = vmul.f32 %v1084_v23, %v1084_v23  ;;  %1746 = vmatmul.mubr.msk.f32.vlgmr.msra.gmra.mrb[12].mxu0 %vm407_vm12, %v1084_v23 }
 0xe96   :  { %2022 = vmatpush1.bf16.msra.mxu0 %v2449_v47  ;;  %1270 = vmatprep.mubr.f32.mxu0 %v2323_v21 }
 0xe97   :  { %v1088_v28 = vmul.f32 %v1086_v24, %v1084_v23  ;;  %v1091_v29 = vadd.f32 %v1090_v27, %v2661_v44  ;;  %2024 = vmatprep.subr.bf16.mxu0 %v2453_v52 }
 0xe99   :  { %v1089_v30 = vadd.f32 %v1088_v28, %v2665_v45  ;;  %v1325_v28 = vld [vmem:[%s2896_s7 + $0x10] sm:$0xff] }
 0xe9a   :  { %2026 = vmatpush1.bf16.msra.mxu0 %v2455_v57  ;;  %v92_v57 = vld [vmem:[%s2889_s0 + $0x38] sm:$0xff] }
 0xe9b   :  { %2028 = vmatprep.subr.bf16.mxu0 %v2458_v62 }
 0xe9e   :  { %2030 = vmatpush1.bf16.msra.mxu0 %v2461_v3 }
 0xe9f   :  { %2032 = vmatprep.subr.bf16.mxu0 %v2464_v8 }
 0xea2   :  { %2034 = vmatpush1.bf16.msra.mxu0 %v2467_v14 }
 0xefb   :  { %v379_v47 = vpop.f32.mrb[12].mxu1 }
 0xefc   :  { %v381_v31 = vpop.f32.mrb[13].mxu1 }
 0xf68   :  { %v1160_v32 = vpop.f32.mrb[12].mxu0 }
 0xf69   :  { %v1161_v33 = vadd.f32 %v1160_v32, %v379_v47  ;;  %v1162_v34 = vpop.f32.mrb[13].mxu0  ;;  %v1327_v47 = vld [vmem:[%s2896_s7 + $0x20] sm:$0xff] }
 0xf6a   :  { %v1163_v35 = vadd.f32 %v1162_v34, %v381_v31  ;;  %v1328_v31 = vld [vmem:[%s2896_s7 + $0x28] sm:$0xff]  ;;  %v1330_v34 = vld [vmem:[%s2896_s7 + $0x38] sm:$0xff] }
 0xf6b   :  { %v1165_v62 = vadd.f32 %v1161_v33, %v2508_v26  ;;  %v2042_v32 = vpack.c.bf16 %v1328_v31, %v1327_v47  ;;  %v1329_v33 = vld [vmem:[%s2896_s7 + $0x30] sm:$0xff]  ;;  %v1527_v31 = vld [vmem:[%s2894_s5 + $0xa8] sm:$0xff] }
 0xf6c   :  { %v1166_v52 = vadd.f32 %v1163_v35, %v2501_v18  ;;  %v2045_v35 = vpack.c.bf16 %v1330_v34, %v1329_v33  ;;  %v1524_v47 = vld [vmem:[%s2894_s5 + $0x90] sm:$0xff]  ;;  %v1511_v34 = vld [vmem:[%s2894_s5 + $0x28] sm:$0xff] }
 0xf6d   :  { %v1747_v3 = vmul.f32 -1.442695, %v1165_v62  ;;  %v1508_v33 = vld [vmem:[%s2894_s5 + $0x10] sm:$0xff] }
 0xf6e   :  { %2191 = vtanh.f32 %v1166_v52  ;;  %v1748_v49 = vmul.f32 -1.442695, %v1166_v52 }
 0xf6f   :  { %2193 = vpow2.f32 %v1747_v3 }
 0xf78   :  { %v2192_v36 = vpop.eup %2191 }
 0xf79   :  { %1182 = vrot.lane.b32.xlu0 %v2192_v36, %s2325_s30  ;;  %v2194_v8 = vpop.eup %2193 }
 0xf7a   :  { %v1173_v14 = vadd.f32 1.0, %v2194_v8 }
 0xf7c   :  { %2195 = vrcp.f32 %v1173_v14 }
 0xf7d   :  { %115 = vperm.xlu0 %2117, %v92_v57  }
 0xf86   :  { %v2196_v37 = vpop.eup %2195 }
 0xf87   :  { %v1180_v41 = vmul.f32 %v2196_v37, %v1078_v6 }
 0xfeb   :  { %v1183_v38 = vpop.permute.xlu0 %1182 }
 0xfec   :  { %v1185_v39 = vmul.f32 %v2196_v37, %v1183_v38 }
 0xfee   :  { %1187 = vrot.lane.b32.xlu1 %v1185_v39, %s2325_s30 }
 0xff2   :  { %163 = vperm.xlu1 %2118, %v140_v40  }
 0xffc   :  { %v116_v46 = vpop.permute.xlu0 %115 }
 0xffd   :  { %vm131_vm13 = vcmp.eq.s32.totalorder %v116_v46, %v2482_v5  ;;  %vm132_vm0 = vcmp.eq.s32.totalorder %v116_v46, %v2485_v7 }
0x1060   :  { %v1188_v43 = vpop.permute.xlu1 %1187 }
0x1061   :  { %v1190_v44 = vadd.f32 %v1188_v43, %v1180_v41 }
0x1063   :  { %2197 = vtanh.f32 %v1190_v44 }
0x1064   :  { %2199 = vpow2.f32 %v1748_v49 }
0x106d   :  { %v2198_v45 = vpop.eup %2197 }
0x106e   :  { %1193 = vrot.lane.b32.xlu0 %v2198_v45, %s2325_s30  ;;  %v2200_v50 = vpop.eup %2199  ;;  %v1412_v45 = vld [vmem:[#allocation7 + $0x8] sm:$0xff] }
0x106f   :  { %v1174_v51 = vadd.f32 1.0, %v2200_v50 }
0x1071   :  { %v164_v48 = vpop.permute.xlu1 %163  ;;  %2201 = vrcp.f32 %v1174_v51  ;;  %v1413_v51 = vld [vmem:[#allocation7 + $0x10] sm:$0xff] }
0x1072   :  { %vm179_vm14 = vcmp.eq.s32.totalorder %v164_v48, %v2482_v5  ;;  %vm180_vm15 = vcmp.eq.s32.totalorder %v164_v48, %v2485_v7 }
0x1073   :  { %vm195_vm1 = vmor %vm131_vm13, %vm179_vm14 }
0x1074   :  { %vm196_vm2 = vmor %vm132_vm0, %vm180_vm15 }
0x1075   :  { %1727 = vmatprep.mubr.msk.f32.mxu1 %vm196_vm2, %v2324_v10 }
0x1076   :  { %1728 = vmatmul.mubr.msk.f32.gmra.mrb[14].mxu1 %vm195_vm1, %v2324_v10 }
0x1077   :  { %1802 = vmatprep.mubr.msk.f32.mxu1 %vm2327_vm3, %v2323_v21 }
0x107b   :  { %v2202_v53 = vpop.eup %2201 }
0x10e0   :  { %v1194_v54 = vpop.permute.xlu0 %1193 }
0x10e1   :  { %v1196_v55 = vmul.f32 %v2202_v53, %v1194_v54  ;;  %v1414_v53 = vld [vmem:[#allocation7 + $0x18] sm:$0xff] }
0x10e2   :  { %v2051_v54 = vpack.c.bf16 %v1414_v53, %v1413_v51 }
0x10e3   :  { %v1198_v56 = vrot.slane %v1196_v55, 2  ;;  %v1202_v5 = vmul.f32 %v1196_v55, %v1196_v55  ;;  %1749 = vmatmul.mubr.msk.f32.vlgmr.msra.gmra.mrb[14].mxu0 %vm407_vm12, %v1196_v55 }
0x10e5   :  { %v1200_v58 = vmul.f32 %v1198_v56, %v1196_v55  ;;  %v1203_v7 = vadd.f32 %v1202_v5, %v1091_v29  ;;  %v1326_v29 = vld [vmem:[%s2896_s7 + $0x18] sm:$0xff]  ;;  %v1415_v55 = vld [vmem:[#allocation7 + $0x20] sm:$0xff]  ;;  %v1416_v56 = vld [vmem:[#allocation7 + $0x28] sm:$0xff] }
0x10e6   :  { %v2054_v5 = vpack.c.bf16 %v1416_v56, %v1415_v55 }
0x10e7   :  { %v2719_v42 = vadd.f32 %v1200_v58, %v1089_v30  ;;  %v2039_v30 = vpack.c.bf16 %v1326_v29, %v1325_v28  ;;  %v1417_v58 = vld [vmem:[#allocation7 + $0x30] sm:$0xff] }
0x10e8   :  { %v1528_v28 = vld [vmem:[%s2894_s5 + $0xb0] sm:$0xff] }
0x1149   :  { %v385_v59 = vpop.f32.mrb[14].mxu1 }
0x114a   :  { %v387_v60 = vpop.f32.mrb[15].mxu1 }
0x11b6   :  { %v1272_v61 = vpop.f32.mrb[14].mxu0 }
0x11b7   :  { %v1273_v10 = vadd.f32 %v1272_v61, %v385_v59  ;;  %v1274_v63 = vpop.f32.mrb[15].mxu0  ;;  %v1507_v59 = vld [vmem:[%s2894_s5 + $0x8] sm:$0xff] }
0x11b8   :  { %v1275_v0 = vadd.f32 %v1274_v63, %v387_v60  ;;  %v1510_v60 = vld [vmem:[%s2894_s5 + $0x20] sm:$0xff]  ;;  %v1509_v63 = vld [vmem:[%s2894_s5 + $0x18] sm:$0xff] }
0x11b9   :  { %v1277_v4 = vadd.f32 %v1273_v10, %v2508_v26  ;;  %v2059_v61 = vpack.c.bf16 %v1510_v60, %v1507_v59  ;;  %v1506_v10 = vld [vmem:[%s2894_s5] sm:$0xff] }
0x11ba   :  { %v1278_v1 = vadd.f32 %v1275_v0, %v2501_v18  ;;  %v1323_v18 = vld [vmem:[%s2896_s7] sm:$0xff] }
0x11bb   :  { %v1750_v6 = vmul.f32 -1.442695, %v1277_v4  ;;  %v2036_v26 = vpack.c.bf16 %v1324_v19, %v1323_v18  ;;  %v1752_v0 = vld [vmem:[%s2897_s8] ss:$0 sm:$0xff]  ;;  %v1519_v18 = vld [vmem:[%s2894_s5 + $0x68] sm:$0xff] }
0x11bc   :  { %2203 = vtanh.f32 %v1278_v1  ;;  %v1751_v52 = vmul.f32 -1.442695, %v1278_v1  ;;  %v1513_v1 = vld [vmem:[%s2894_s5 + $0x38] sm:$0xff]  ;;  %v1522_v19 = vld [vmem:[%s2894_s5 + $0x80] sm:$0xff] }
0x11bd   :  { %2205 = vpow2.f32 %v1750_v6  ;;  %2037 = vmatpush3.bf16.msra.mxu1 %v2036_v26  ;;  %v2061_v6 = vpack.c.bf16 %v1509_v63, %v1506_v10 }
0x11be   :  { %2038 = vmatprep.subr.bf16.mxu1 %v2326_v20 }
0x11c1   :  { %2040 = vmatpush3.bf16.msra.mxu1 %v2039_v30 }
0x11c2   :  { %2041 = vmatprep.subr.bf16.mxu1 %v2326_v20 }
0x11c5   :  { %2043 = vmatpush3.bf16.msra.mxu1 %v2042_v32  ;;  %v2073_v32 = vpack.c.bf16 %v1527_v31, %v1524_v47 }
0x11c6   :  { %v2204_v2 = vpop.eup %2203  ;;  %2044 = vmatprep.subr.bf16.mxu1 %v2326_v20 }
0x11c7   :  { %1294 = vrot.lane.b32.xlu1 %v2204_v2, %s2325_s30  ;;  %v2206_v9 = vpop.eup %2205  ;;  %v1516_v2 = vld [vmem:[%s2894_s5 + $0x50] sm:$0xff] }
0x11c8   :  { %v1285_v11 = vadd.f32 1.0, %v2206_v9 }
0x11c9   :  { %2046 = vmatpush3.bf16.msra.mxu1 %v2045_v35  ;;  %v2076_v35 = vpack.c.bf16 %v1511_v34, %v1508_v33 }
0x11ca   :  { %2207 = vrcp.f32 %v1285_v11  ;;  %2047 = vmatprep.subr.bf16.mxu1 %v2326_v20 }
0x11d4   :  { %v2208_v12 = vpop.eup %2207 }
0x11d5   :  { %v1292_v22 = vmul.f32 %v2208_v12, %v1190_v44  ;;  %v1411_v44 = vld [vmem:[#allocation7] sm:$0xff] }
0x11d6   :  { %v2048_v49 = vpack.c.bf16 %v1412_v45, %v1411_v44  ;;  %v1530_v45 = vld [vmem:[%s2895_s6] sm:$0x7]  ;;  %s2328_s6 = smov [#allocation8]  }
0x11d7   :  { %s1699_s4 = sshll.u32 %s2328_s6, 4  ;;  %s1700_s4 = int_to_ptr.vmem [resolvable:$true] %s1699_s4 }
0x11d8   :  { %s2287_s13 = scalar_lea.vmem %s1700_s4, 32  ;;  %p2292_p11 = scmp.lt.s32.totalorder %s1700_s4, %s1700_s4 }
0x11d9   :  { %p2288_p10 = scmp.ne.s32.totalorder %s1700_s4, %s2287_s13  ;;  %p2293_p12 = scmp.lt.s32.totalorder %s2287_s13, %s2287_s13 }
0x11db   :  { %p2294_p13 = por %p2293_p12, %p2292_p11 }
0x11dd   :  { %p2295_p0 = pnand %p2294_p13, %p2288_p10 }
0x1239   :  { %v1295_v16 = vpop.permute.xlu1 %1294 }
0x123a   :  { %v1297_v17 = vmul.f32 %v2208_v12, %v1295_v16  ;;  %v2063_v12 = vpack.c.bf16 %v1516_v2, %v1513_v1  ;;  %v1512_v16 = vld [vmem:[%s2894_s5 + $0x30] sm:$0xff] }
0x123c   :  { %1299 = vrot.lane.b32.xlu0 %v1297_v17, %s2325_s30  ;;  %v1515_v17 = vld [vmem:[%s2894_s5 + $0x48] sm:$0xff] }
0x123d   :  { %v2065_v26 = vpack.c.bf16 %v1515_v17, %v1512_v16 }
0x12ae   :  { %v1300_v23 = vpop.permute.xlu0 %1299 }
0x12af   :  { %v1302_v24 = vadd.f32 %v1300_v23, %v1292_v22  ;;  %v2067_v22 = vpack.c.bf16 %v1522_v19, %v1519_v18  ;;  %v1518_v23 = vld [vmem:[%s2894_s5 + $0x60] sm:$0xff] }
0x12b1   :  { %2209 = vtanh.f32 %v1302_v24  ;;  %v1521_v24 = vld [vmem:[%s2894_s5 + $0x78] sm:$0xff] }
0x12b2   :  { %2211 = vpow2.f32 %v1751_v52  ;;  %v2069_v29 = vpack.c.bf16 %v1521_v24, %v1518_v23  ;;  %v1514_v52 = vld [vmem:[%s2894_s5 + $0x40] sm:$0xff] }
0x12bb   :  { %v2210_v27 = vpop.eup %2209 }
0x12bc   :  { %1305 = vrot.lane.b32.xlu1 %v2210_v27, %s2325_s30  ;;  %v2212_v36 = vpop.eup %2211  ;;  %v1525_v27 = vld [vmem:[%s2894_s5 + $0x98] sm:$0xff] }
0x12bd   :  { %v1286_v57 = vadd.f32 1.0, %v2212_v36  ;;  %v2071_v30 = vpack.c.bf16 %v1528_v28, %v1525_v27  ;;  %v1517_v36 = vld [vmem:[%s2894_s5 + $0x58] sm:$0xff] }
0x12bf   :  { %2213 = vrcp.f32 %v1286_v57  ;;  %v2079_v57 = vpack.c.bf16 %v1517_v36, %v1514_v52 }
0x12c9   :  { %v2214_v62 = vpop.eup %2213 }
0x132e   :  { %v1306_v3 = vpop.permute.xlu1 %1305 }
0x132f   :  { %v2757_v8 = vmul.f32 %v2214_v62, %v1306_v3  ;;  %v1520_v62 = vld [vmem:[%s2894_s5 + $0x70] sm:$0xff]  ;;  %v1523_v3 = vld [vmem:[%s2894_s5 + $0x88] sm:$0xff] }
0x1331   :  { %v1314_v14 = vmul.f32 %v2757_v8, %v2757_v8  ;;  %v1310_v41 = vrot.slane %v2757_v8, 2 }
0x1333   :  { %v1315_v37 = vadd.f32 %v1314_v14, %v1203_v7  ;;  %v1312_v43 = vmul.f32 %v1310_v41, %v2757_v8  ;;  %v1418_v7 = vld [vmem:[#allocation7 + $0x38] sm:$0xff]  ;;  %v2082_v14 = vpack.c.bf16 %v1523_v3, %v1520_v62 }
0x1335   :  { %v1317_v38 = vrot.slane %v1315_v37, 2  ;;  %v1313_v46 = vadd.f32 %v1312_v43, %v2719_v42  ;;  %v2057_v42 = vpack.c.bf16 %v1418_v7, %v1417_v58 }
0x1337   :  { %v1319_v39 = vmul.f32 %v1317_v38, %v1315_v37  ;;  %v1526_v37 = vld [vmem:[%s2894_s5 + $0xa0] sm:$0xff] }
0x1339   :  { %v1320_v40 = vmax.f32 %v1319_v39, 1e-16  ;;  %v1754_v39 = vld [vmem:[%s2899_s10] ss:$0 sm:$0xff] }
0x133b   :  { %2215 = vrsqrt.f32 %v1320_v40 }
0x1345   :  { %v2216_v48 = vpop.eup %2215 }
0x1346   :  { %v1322_v50 = vmul.f32 %v2216_v48, %v1313_v46  ;;  %v1539_v46 = vrot.slane %v1530_v45, %v489_v15 }
0x1348   :  { %1803 = vmatmul.mubr.msk.f32.vlgmr.msra.gmra.mrb[16].mxu1 %vm407_vm12, %v1322_v50 }
0x1349   :  { %2049 = vmatpush3.bf16.msra.mxu1 %v2048_v49  ;;  %1821 = vmatprep.mubr.msk.f32.mxu1 %vm2327_vm3, %v2323_v21 }
0x134a   :  { %2050 = vmatprep.subr.bf16.mxu1 %v2326_v20 }
0x134d   :  { %2052 = vmatpush3.bf16.msra.mxu1 %v2051_v54 }
0x134e   :  { %2053 = vmatprep.subr.bf16.mxu1 %v2326_v20 }
0x1351   :  { %2055 = vmatpush3.bf16.msra.mxu1 %v2054_v5 }
0x1352   :  { %2056 = vmatprep.subr.bf16.mxu1 %v2326_v20 }
0x1355   :  { %2058 = vmatpush3.bf16.msra.mxu1 %v2057_v42 }
0x1356   :  { %2060 = vmatprep.subr.bf16.mxu1 %v2059_v61 }
0x141b   :  { %v1407_v4 = vpop.f32.mrb[16].mxu1 }
0x141c   :  { %v1408_v9 = vadd.f32 %v1752_v0, %v1407_v4  ;;  %v1804_v11 = vpop.f32.mrb[17].mxu1 }
0x141e   :  { %1822 = vmatmul.mubr.msk.f32.vlgmr.msra.gmra.mrb[18].mxu1 %vm407_vm12, %v1408_v9 }
0x141f   :  { %2062 = vmatpush1.bf16.msra.mxu1 %v2061_v6  ;;  %1613 = vmatprep.mubr.f32.mxu1 %v2323_v21 }
0x1420   :  { %2064 = vmatprep.subr.bf16.mxu1 %v2063_v12 }
0x1423   :  { %2066 = vmatpush1.bf16.msra.mxu1 %v2065_v26 }
0x1424   :  { %2068 = vmatprep.subr.bf16.mxu1 %v2067_v22 }
0x1427   :  { %2070 = vmatpush1.bf16.msra.mxu1 %v2069_v29 }
0x1428   :  { %2072 = vmatprep.subr.bf16.mxu1 %v2071_v30 }
0x142b   :  { %2074 = vmatpush1.bf16.msra.mxu1 %v2073_v32 }
0x142c   :  { %2075 = vmatprep.subr.bf16.mxu1 %v2326_v20 }
0x142e   :  { %1757 = vmatmul.mubr.msk.f32.vlgmr.msra.gmra.mrb[20].mxu1 %vm407_vm12, %v2757_v8 }
0x142f   :  { %2077 = vmatpush3.bf16.msra.mxu1 %v2076_v35  ;;  %1840 = vmatprep.mubr.msk.f32.mxu1 %vm2327_vm3, %v2323_v21  ;;  %v1529_v21 = vld [vmem:[%s2894_s5 + $0xb8] sm:$0xff] }
0x1430   :  { %2078 = vmatprep.subr.bf16.mxu1 %v2326_v20  ;;  %v2085_v38 = vpack.c.bf16 %v1529_v21, %v1526_v37 }
0x1433   :  { %2080 = vmatpush3.bf16.msra.mxu1 %v2079_v57 }
0x1434   :  { %2081 = vmatprep.subr.bf16.mxu1 %v2326_v20 }
0x1437   :  { %2083 = vmatpush3.bf16.msra.mxu1 %v2082_v14 }
0x1438   :  { %2084 = vmatprep.subr.bf16.mxu1 %v2326_v20  ;;  %v1535_v20 = vrot.slane %v1530_v45, %v485_v25  ;;  %v1542_v25 = vsub.s32 2, %v2493_v13 }
0x143a   :  { %v1543_v54 = vrot.slane %v1530_v45, %v1542_v25 }
0x143b   :  { %2086 = vmatpush3.bf16.msra.mxu1 %v2085_v38 }
0x143e   :  { %1841 = vmatmul.mubr.msk.f32.vlgmr.msra.gmra.mrb[22].mxu1 %vm407_vm12, %v2757_v8 }
0x14f1   :  { %v1495_v40 = vpop.f32.mrb[18].mxu1 }
0x14f2   :  { %v1496_v41 = vadd.f32 %v1754_v39, %v1495_v40  ;;  %v1823_v43 = vpop.f32.mrb[19].mxu1 }
0x14f4   :  { %v1756_v44 = vmul.f32 -1.442695, %v1496_v41 }
0x14f6   :  { %2217 = vpow2.f32 %v1756_v44 }
0x1500   :  { %v2218_v8 = vpop.eup %2217 }
0x1501   :  { %v1502_v48 = vadd.f32 1.0, %v2218_v8  ;;  %v1615_v49 = vpop.f32.mrb[20].mxu1 }
0x1502   :  { %v1616_v50 = vadd.f32 %v1615_v49, %v1535_v20  ;;  %v1617_v51 = vpop.f32.mrb[21].mxu1 }
0x1503   :  { %2219 = vrcp.f32 %v1502_v48  ;;  %v1618_v53 = vadd.f32 %v1617_v51, %v1539_v46 }
0x1504   :  { %1690 = vst [vmem:[%s2901_s12] sm:$0xff] %v1616_v50 }
0x1505   :  { %1691 = vst [vmem:[%s2901_s12 + $0x8] sm:$0xff] %v1618_v53 }
0x150d   :  { %v2220_v15 = vpop.eup %2219 }
0x150e   :  { %1505 = vst [vmem:[#allocation8] sm:$0x3] %v2220_v15 }
0x150f   :  { %2298 = shalt.err (!%p2295_p0)
}
0x1510   :  { %s2299_s18 = scalar_lea.hbm %s2900_s11, 32 }
0x1511   :  { %p2300_p1 = scmp.ne.s32.totalorder %s2900_s11, %s2299_s18  ;;  %p2303_p2 = scmp.lt.u32.totalorder %s2299_s18, %s2900_s11 }
0x1513   :  { %p2305_p3 = pnand %p2303_p2, %p2300_p1 }
0x1515   :  { %2308 = shalt.err (!%p2305_p3)
}
0x1516   :  { %1702 = dma.vmem_to_hbm [thread:$0]  %s1700_s4, 32, %s2900_s11, [#allocation4]   ;;  %v1686_v13 = vpop.f32.mrb[22].mxu1 }
0x1517   :  { %v1687_v55 = vadd.f32 %v1686_v13, %v1543_v54  ;;  %v1842_v56 = vpop.f32.mrb[23].mxu1 }
0x1519   :  { %1692 = vst [vmem:[%s2901_s12 + $0x10] sm:$0xff] %v1687_v55 }
0x151a   :  { %2313 = dma.done.wait [#allocation4], 32  }
0x151b   :  { %2314 = vsyncadd [#allocation4], 4294967264 }
0x151c   :  { %1710 = vsyncpa [#allocation3], 1 }
0x151d   :  { %1711 = vsyncpa [#allocation6], 1 }
0x151e   :  { %1712 = vsyncpa [#allocation4], 1 }

</bundles_post_ra>
